<compile_context>
chip_gen: v6e
topology: v6e:2x2x1
jax: 0.10.0
libtpu: 0.0.40
codegen_flags: <defaults>
</compile_context>

<pallas_src>
import functools

import jax
import jax.numpy as jnp
from jax.experimental import pallas as pl
from jax.experimental.pallas import tpu as pltpu


def _vq_kernel(z_ref, e_ref, et_ref, e2_ref, zq_ref, idx_ref, loss_ref,
               esum_ref, *, n_valid, tile_n, ragged, distance_in_bf16):
    i = pl.program_id(0)
    hp = jax.lax.Precision.HIGHEST

    zT = z_ref[...].astype(jnp.float32)            # (D, TN), lane-dense
    z2 = zT * -2.0                                 # fold the -2 once per tile

    # d[k, t] = ||e_k||^2 - 2 <e_k, z_t>   (||z_t||^2 is argmin-invariant)
    if distance_in_bf16:
        dmm = jnp.dot(e_ref[...].astype(jnp.bfloat16), z2.astype(jnp.bfloat16),
                      preferred_element_type=jnp.float32)
    else:
        dmm = jnp.dot(e_ref[...], z2, preferred_element_type=jnp.float32,
                      precision=hp)
    d = e2_ref[...] + dmm                          # (n_e, TN); (n_e,1) lane-bcast

    # argmin over the codebook (sublane) axis, first occurrence on ties.
    n_e = d.shape[0]
    min_val = jnp.min(d, axis=0, keepdims=True)                     # (1, TN)
    k_iota = jax.lax.broadcasted_iota(jnp.int32, d.shape, 0).astype(jnp.float32)
    idx_f = jnp.min(jnp.where(d == min_val, k_iota, float(n_e)),
                    axis=0, keepdims=True)                          # (1, TN)
    one_hot = (k_iota == idx_f).astype(jnp.float32)                 # (n_e, TN)

    # z_q^T = E^T @ one_hot : exact codebook gather on the MXU.
    zqT = jnp.dot(et_ref[...], one_hot, preferred_element_type=jnp.float32,
                  precision=hp)                                     # (D, TN)

    zq_ref[...] = zqT.astype(zq_ref.dtype)          # lane-dense, unmasked store
    idx_ref[...] = idx_f.astype(jnp.int32)          # (1, TN) lane-dense

    diff = zqT - zT

    def _full_sums():
        loss_ref[...] = jnp.sum(diff * diff).reshape(loss_ref.shape)
        ones_row = jnp.ones((1, tile_n), jnp.float32)
        # usage column-sums on the (otherwise idle) MXU: (1,TN) x (n_e,TN)^T
        esum_ref[...] = jax.lax.dot_general(
            ones_row, one_hot, (((1,), (1,)), ((), ())),
            preferred_element_type=jnp.float32).reshape(esum_ref.shape)

    if not ragged:
        _full_sums()
    else:
        last = pl.num_programs(0) - 1

        @pl.when(i != last)
        def _():
            _full_sums()

        @pl.when(i == last)
        def _():
            col = i * tile_n + jax.lax.broadcasted_iota(jnp.int32, (1, tile_n), 1)
            valid = (col < n_valid).astype(jnp.float32)             # (1, TN)
            dm = diff * valid
            loss_ref[...] = jnp.sum(dm * dm).reshape(loss_ref.shape)
            esum_ref[...] = jax.lax.dot_general(
                valid, one_hot, (((1,), (1,)), ((), ())),
                preferred_element_type=jnp.float32).reshape(esum_ref.shape)


def _round_up(x, m):
    return -(-x // m) * m


def _vmem_bytes(tile_n, n_e, e_dim):
    """Conservative VMEM working-set estimate (f32/int32, (8,128) tile padding)."""
    sub = lambda r: _round_up(max(r, 1), 8)
    lane = lambda c: _round_up(max(c, 1), 128)
    blk = lambda r, c: sub(r) * lane(c) * 4
    streamed = 2 * (blk(e_dim, tile_n)        # z^T in   (double buffered)
                    + blk(e_dim, tile_n)      # z_q^T out
                    + blk(1, tile_n)          # idx out
                    + blk(1, 1)               # loss partial
                    + blk(1, n_e))            # usage partial
    resident = 2 * (blk(n_e, e_dim)           # E
                    + blk(e_dim, n_e)         # E^T
                    + blk(n_e, 1))            # ||e||^2 column
    intermediates = 4 * blk(n_e, tile_n)      # d, iota, select temp, one-hot
    return streamed + resident + intermediates


def _choose_tile_n(n_rows, n_e, e_dim, budget=24 * 1024 * 1024):
    padded = _round_up(max(n_rows, 1), 128)
    # largest 128-multiple whose full working set fits the (portable) budget
    tile = 128
    for cand in range(128, min(4096, padded) + 1, 128):
        if _vmem_bytes(cand, n_e, e_dim) <= budget:
            tile = cand
    # keep >= min(4, padded//128) grid steps so the "parallel" axis can feed
    # both TensorCores on v7x (megacore); per-step overhead is negligible.
    want_tiles = min(4, padded // 128)
    if want_tiles > 1:
        tile = min(tile, max(128, (padded // want_tiles) // 128 * 128))
    return min(tile, padded)


def _vq_pallas(zT, embedding, *, tile_n=None, distance_in_bf16=False):
    """zT: (e_dim, N) f32 channel-major layout; embedding: (n_e, e_dim)."""
    D, N = zT.shape
    n_e = embedding.shape[0]
    if tile_n is None:
        tile_n = _choose_tile_n(N, n_e, D)
    num_tiles = pl.cdiv(N, tile_n)
    n_pad = num_tiles * tile_n
    if n_pad != N:
        zT = jnp.pad(zT, ((0, 0), (0, n_pad - N)))

    e_f32 = embedding.astype(jnp.float32)                       # (n_e, D)
    et_f32 = e_f32.T                                             # (D, n_e), once
    e_sq = jnp.sum(e_f32 * e_f32, axis=1, keepdims=True)        # (n_e, 1)

    kernel = functools.partial(
        _vq_kernel, n_valid=N, tile_n=tile_n, ragged=(n_pad != N),
        distance_in_bf16=distance_in_bf16)

    vmem_need = _vmem_bytes(tile_n, n_e, D)
    vmem_limit = int(min(max(vmem_need + vmem_need // 4 + (4 << 20), 32 << 20),
                         64 << 20))

    out_shapes = (
        jax.ShapeDtypeStruct((D, n_pad), jnp.float32),           # z_q^T
        jax.ShapeDtypeStruct((1, n_pad), jnp.int32),             # indices
        jax.ShapeDtypeStruct((num_tiles, 1, 1), jnp.float32),    # loss partials
        jax.ShapeDtypeStruct((num_tiles, 1, n_e), jnp.float32),  # usage partials
    )

    zqT, idx_row, loss_p, esum_p = pl.pallas_call(
        kernel,
        out_shape=out_shapes,
        grid_spec=pltpu.PrefetchScalarGridSpec(
            num_scalar_prefetch=0,
            grid=(num_tiles,),
            in_specs=[
                pl.BlockSpec((D, tile_n), lambda i: (0, i)),
                pl.BlockSpec((n_e, D), lambda i: (0, 0)),
                pl.BlockSpec((D, n_e), lambda i: (0, 0)),
                pl.BlockSpec((n_e, 1), lambda i: (0, 0)),
            ],
            out_specs=[
                pl.BlockSpec((D, tile_n), lambda i: (0, i)),
                pl.BlockSpec((1, tile_n), lambda i: (0, i)),
                pl.BlockSpec((1, 1, 1), lambda i: (i, 0, 0)),
                pl.BlockSpec((1, 1, n_e), lambda i: (i, 0, 0)),
            ],
        ),
        compiler_params=pltpu.CompilerParams(
            dimension_semantics=("parallel",),     # no cross-step state
            vmem_limit_bytes=vmem_limit,
        ),
    )(zT, e_f32, et_f32, e_sq)

    zqT = zqT[:, :N]
    idx_flat = idx_row[0, :N]
    loss_sum = jnp.sum(loss_p)
    enc_sum = jnp.sum(esum_p.reshape(num_tiles, n_e), axis=0)    # (n_e,)
    return zqT, idx_flat, loss_sum, enc_sum


class VectorQuantizer:
    """JAX/Pallas port of the PyTorch VectorQuantizer forward pass."""

    def __init__(self, n_e, e_dim, beta, mult=1, normalize=False, key=None,
                 distance_in_bf16=False):
        assert e_dim % mult == 0
        self.n_e = n_e
        self.e_dim = e_dim // mult
        self.beta = beta
        self.mult = mult
        self.normalize = normalize
        self.distance_in_bf16 = distance_in_bf16
        if key is None:
            key = jax.random.PRNGKey(0)
        if self.e_dim <= 1:
            self.embedding = jax.random.uniform(
                key, (self.n_e, self.e_dim), jnp.float32, 0.0, 1.0)
        else:
            lim = 1.0 / self.n_e
            self.embedding = jax.random.uniform(
                key, (self.n_e, self.e_dim), jnp.float32, -lim, lim)

    def __call__(self, z):
        orig_shape = z.shape
        ndim = z.ndim
        D = self.e_dim
        # channel axis that the PyTorch module moves to the end
        ch_axis = ndim - 3 if ndim >= 4 else ndim - 1
        ch_size = orig_shape[ch_axis]

        z = z.astype(jnp.float32)
        if ch_size == D:
            # Single transpose (channel to the front) -> lane-dense (D, N) with
            # columns ordered exactly like the reference's NHWC flattening.
            z_moved = jnp.moveaxis(z, ch_axis, 0)
            moved_shape = z_moved.shape
            zT = z_moved.reshape(D, -1)
        else:
            # mult > 1: channel is split into `mult` sub-vectors per position.
            z_perm = jnp.moveaxis(z, ch_axis, -1) if ndim >= 4 else z
            perm_shape = z_perm.shape
            zT = z_perm.reshape(-1, D).T
        N = zT.shape[1]

        zqT, idx_flat, loss_sum, enc_sum = _vq_pallas(
            zT, self.embedding, distance_in_bf16=self.distance_in_bf16)

        # back to the module's input layout
        if ch_size == D:
            z_q = jnp.moveaxis(zqT.reshape(moved_shape), 0, ch_axis)
        else:
            zq_perm = zqT.T.reshape(perm_shape)
            z_q = jnp.moveaxis(zq_perm, -1, ch_axis) if ndim >= 4 else zq_perm

        if self.normalize:
            # matches torch (no epsilon): z_q / ||z_q||_2 over the channel axis
            # TODO(synk): NaN if a selected codebook row is exactly zero (as in torch).
            z_q = z_q / jnp.linalg.norm(z_q, axis=ch_axis, keepdims=True)
            mse = jnp.mean((z_q - z) ** 2)
        else:
            mse = loss_sum / (N * D)

        # loss = mean((sg(z_q)-z)^2) + beta*mean((z_q-sg(z))^2); both terms are
        # numerically identical in the forward pass.
        # TODO(synk): exact straight-through / commitment gradients need jax.custom_vjp.
        loss = mse + self.beta * mse

        # straight-through estimator (value-preserving in the forward pass)
        z_q = z + jax.lax.stop_gradient(z_q - z)

        min_idx = idx_flat[:, None].astype(jnp.int32)
        # min_encodings only exists because the module's API returns it; the
        # kernel does not emit the full (N, n_e) one-hot stream.
        min_encodings = jax.nn.one_hot(idx_flat, self.n_e, dtype=jnp.float32)

        e_mean = enc_sum / N
        perplexity = jnp.exp(-jnp.sum(e_mean * jnp.log(e_mean + 1e-10)))

        return z_q, loss, (perplexity, min_encodings, min_idx)


def _reference(z, embedding, beta):
    # pure-JAX reference (mirrors the PyTorch forward), exact f32 matmuls
    hp = jax.lax.Precision.HIGHEST
    z_perm = jnp.transpose(z, (0, 2, 3, 1))
    zf = z_perm.reshape(-1, embedding.shape[1])
    d = (jnp.sum(zf ** 2, axis=1, keepdims=True)
         + jnp.sum(embedding ** 2, axis=1)
         - 2.0 * jnp.matmul(zf, embedding.T, precision=hp))
    idx = jnp.argmin(d, axis=1)
    one_hot = jax.nn.one_hot(idx, embedding.shape[0], dtype=zf.dtype)
    zq = jnp.matmul(one_hot, embedding, precision=hp).reshape(z_perm.shape)
    mse = jnp.mean((zq - z_perm) ** 2)
    loss = mse + beta * mse
    e_mean = jnp.mean(one_hot, axis=0)
    perp = jnp.exp(-jnp.sum(e_mean * jnp.log(e_mean + 1e-10)))
    return jnp.transpose(zq, (0, 3, 1, 2)), loss, perp, idx


if __name__ == "__main__":
    key = jax.random.PRNGKey(0)
    k_emb, k_x, k_x2 = jax.random.split(key, 3)

    n_e, channels, beta = 128, 4, 0.25
    vq = VectorQuantizer(n_e=n_e, e_dim=channels, beta=beta, key=k_emb)

    # full-tile path (N = 512, multiple of 128)
    x = jax.random.normal(k_x, (2, channels, 16, 16), jnp.float32)  # NCHW
    z_q, loss, (perplexity, min_encodings, min_idx) = vq(x)
    jax.block_until_ready((z_q, loss, perplexity, min_encodings, min_idx))

    zq_ref, loss_ref, perp_ref, idx_ref = _reference(x, vq.embedding, beta)
    assert jnp.allclose(z_q, zq_ref, atol=1e-5), "z_q mismatch"
    assert jnp.allclose(loss, loss_ref, atol=1e-5), "loss mismatch"
    assert jnp.allclose(perplexity, perp_ref, atol=1e-4), "perplexity mismatch"
    assert jnp.array_equal(min_idx[:, 0], idx_ref.astype(jnp.int32)), "idx mismatch"
    assert min_encodings.shape == (2 * 16 * 16, n_e)

    # ragged / masked-tail path (N = 35, not a multiple of 128)
    x2 = jax.random.normal(k_x2, (1, channels, 5, 7), jnp.float32)
    z_q2, loss2, (perp2, enc2, idx2) = vq(x2)
    jax.block_until_ready((z_q2, loss2, perp2))
    zq_ref2, loss_ref2, perp_ref2, idx_ref2 = _reference(x2, vq.embedding, beta)
    assert jnp.allclose(z_q2, zq_ref2, atol=1e-5), "z_q mismatch (ragged)"
    assert jnp.allclose(loss2, loss_ref2, atol=1e-5), "loss mismatch (ragged)"
    assert jnp.allclose(perp2, perp_ref2, atol=1e-4), "perplexity mismatch (ragged)"
    assert jnp.array_equal(idx2[:, 0], idx_ref2.astype(jnp.int32)), "idx mismatch (ragged)"

    print("KERNEL_OK")
</pallas_src>

<mosaic_0001>
module attributes {stable_mosaic.version = 11 : i64} {
  func.func @_vq_kernel(%arg0: i32, %arg1: memref<4x128xf32, #tpu.memory_space<vmem>>, %arg2: memref<128x4xf32, #tpu.memory_space<vmem>>, %arg3: memref<4x128xf32, #tpu.memory_space<vmem>>, %arg4: memref<128x1xf32, #tpu.memory_space<vmem>>, %arg5: memref<4x128xf32, #tpu.memory_space<vmem>>, %arg6: memref<1x128xi32, #tpu.memory_space<vmem>>, %arg7: memref<1x1x1xf32, #tpu.memory_space<vmem>>, %arg8: memref<1x1x128xf32, #tpu.memory_space<vmem>>) attributes {dimension_semantics = [#tpu.dimension_semantics<parallel>], iteration_bounds = array<i64: 4>, scalar_prefetch = 0 : i64, scratch_operands = 0 : i64, tpu.core_type = #tpu.core_type<tc>, window_params = [{transform_indices = @transform_0, window_bounds = array<i64: 4, 128>}, {pipeline_mode = #tpu.pipeline_mode<synchronous>, transform_indices = @transform_1, window_bounds = array<i64: 128, 4>}, {pipeline_mode = #tpu.pipeline_mode<synchronous>, transform_indices = @transform_2, window_bounds = array<i64: 4, 128>}, {pipeline_mode = #tpu.pipeline_mode<synchronous>, transform_indices = @transform_3, window_bounds = array<i64: 128, 1>}, {transform_indices = @transform_4, window_bounds = array<i64: 4, 128>}, {transform_indices = @transform_5, window_bounds = array<i64: 1, 128>}, {transform_indices = @transform_6, window_bounds = array<i64: 1, 1, 1>}, {transform_indices = @transform_7, window_bounds = array<i64: 1, 1, 128>}]} {
    %c0 = arith.constant 0 : index
    %c0_0 = arith.constant 0 : index
    %0 = vector.load %arg1[%c0, %c0_0] : memref<4x128xf32, #tpu.memory_space<vmem>>, vector<4x128xf32>
    %cst = arith.constant -2.000000e+00 : f32
    %1 = vector.broadcast %cst : f32 to vector<4x128xf32>
    %2 = arith.mulf %0, %1 : vector<4x128xf32>
    %c0_1 = arith.constant 0 : index
    %c0_2 = arith.constant 0 : index
    %3 = vector.load %arg2[%c0_1, %c0_2] : memref<128x4xf32, #tpu.memory_space<vmem>>, vector<128x4xf32>
    %cst_3 = arith.constant dense<0.000000e+00> : vector<128x128xf32>
    %4 = tpu.matmul %3, %2, %cst_3 {dimension_numbers = #tpu.dot_dimension_numbers<[1], [0], [0], [1], [0, 0, 1, 1], [], []>, precision = #tpu.contract_precision<fp32>} : vector<128x4xf32>, vector<4x128xf32>, vector<128x128xf32> -> vector<128x128xf32>
    %c0_4 = arith.constant 0 : index
    %c0_5 = arith.constant 0 : index
    %5 = vector.load %arg4[%c0_4, %c0_5] : memref<128x1xf32, #tpu.memory_space<vmem>>, vector<128x1xf32>
    %6 = vector.broadcast %5 : vector<128x1xf32> to vector<128x128xf32>
    %7 = arith.addf %6, %4 : vector<128x128xf32>
    %cst_6 = arith.constant dense<0x7F800000> : vector<128xf32>
    %8 = vector.multi_reduction <minimumf>, %7, %cst_6 [0] : vector<128x128xf32> to vector<128xf32>
    %9 = vector.shape_cast %8 : vector<128xf32> to vector<1x128xf32>
    %10 = tpu.iota {dimensions = array<i32: 0>} : vector<128x128xi32>
    %11 = arith.sitofp %10 : vector<128x128xi32> to vector<128x128xf32>
    %12 = vector.broadcast %9 : vector<1x128xf32> to vector<128x128xf32>
    %13 = arith.cmpf oeq, %7, %12 : vector<128x128xf32>
    %cst_7 = arith.constant 1.280000e+02 : f32
    %14 = vector.broadcast %cst_7 : f32 to vector<128x128xf32>
    %15 = arith.select %13, %11, %14 : vector<128x128xi1>, vector<128x128xf32>
    %cst_8 = arith.constant dense<0x7F800000> : vector<128xf32>
    %16 = vector.multi_reduction <minimumf>, %15, %cst_8 [0] : vector<128x128xf32> to vector<128xf32>
    %17 = vector.shape_cast %16 : vector<128xf32> to vector<1x128xf32>
    %18 = vector.broadcast %17 : vector<1x128xf32> to vector<128x128xf32>
    %19 = arith.cmpf oeq, %11, %18 : vector<128x128xf32>
    %20 = arith.extui %19 : vector<128x128xi1> to vector<128x128xi32>
    %21 = arith.sitofp %20 : vector<128x128xi32> to vector<128x128xf32>
    %c0_9 = arith.constant 0 : index
    %c0_10 = arith.constant 0 : index
    %22 = vector.load %arg3[%c0_9, %c0_10] : memref<4x128xf32, #tpu.memory_space<vmem>>, vector<4x128xf32>
    %cst_11 = arith.constant dense<0.000000e+00> : vector<4x128xf32>
    %23 = tpu.matmul %22, %21, %cst_11 {dimension_numbers = #tpu.dot_dimension_numbers<[1], [0], [0], [1], [0, 0, 1, 1], [], []>, precision = #tpu.contract_precision<fp32>} : vector<4x128xf32>, vector<128x128xf32>, vector<4x128xf32> -> vector<4x128xf32>
    %c0_12 = arith.constant 0 : index
    %c0_13 = arith.constant 0 : index
    %24 = vector.load %arg5[%c0_12, %c0_13] : memref<4x128xf32, #tpu.memory_space<vmem>>, vector<4x128xf32>
    tpu.vector_store %arg5[%c0_12, %c0_13], %23 {strides = array<i32>} : memref<4x128xf32, #tpu.memory_space<vmem>>, vector<4x128xf32>,
    %25 = arith.fptosi %17 : vector<1x128xf32> to vector<1x128xi32>
    %c0_14 = arith.constant 0 : index
    %c0_15 = arith.constant 0 : index
    %26 = vector.load %arg6[%c0_14, %c0_15] : memref<1x128xi32, #tpu.memory_space<vmem>>, vector<1x128xi32>
    tpu.vector_store %arg6[%c0_14, %c0_15], %25 {strides = array<i32>} : memref<1x128xi32, #tpu.memory_space<vmem>>, vector<1x128xi32>,
    %27 = arith.subf %23, %0 : vector<4x128xf32>
    %28 = arith.mulf %27, %27 : vector<4x128xf32>
    %29 = vector.shape_cast %28 : vector<4x128xf32> to vector<1x4x128xf32>
    %cst_16 = arith.constant dense<0.000000e+00> : vector<1xf32>
    %30 = vector.multi_reduction <add>, %29, %cst_16 [1, 2] : vector<1x4x128xf32> to vector<1xf32>
    %31 = vector.shape_cast %30 : vector<1xf32> to vector<1x1x1xf32>
    %32 = vector.extract %31[0, 0, 0] : f32 from vector<1x1x1xf32>
    %33 = vector.broadcast %32 : f32 to vector<1x1x1xf32>
    %c0_17 = arith.constant 0 : index
    %c0_18 = arith.constant 0 : index
    %c0_19 = arith.constant 0 : index
    %34 = vector.load %arg7[%c0_17, %c0_18, %c0_19] : memref<1x1x1xf32, #tpu.memory_space<vmem>>, vector<1x1x1xf32>
    tpu.vector_store %arg7[%c0_17, %c0_18, %c0_19], %33 {strides = array<i32>} : memref<1x1x1xf32, #tpu.memory_space<vmem>>, vector<1x1x1xf32>,
    %cst_20 = arith.constant 1.000000e+00 : f32
    %35 = vector.broadcast %cst_20 : f32 to vector<1x128xf32>
    %cst_21 = arith.constant dense<0.000000e+00> : vector<1x128xf32>
    %36 = tpu.matmul %35, %21, %cst_21 {dimension_numbers = #tpu.dot_dimension_numbers<[1], [1], [0], [0], [0, 0, 1, 0], [], []>} : vector<1x128xf32>, vector<128x128xf32>, vector<1x128xf32> -> vector<1x128xf32>
    %37 = vector.shape_cast %36 : vector<1x128xf32> to vector<1x1x128xf32>
    %c0_22 = arith.constant 0 : index
    %c0_23 = arith.constant 0 : index
    %c0_24 = arith.constant 0 : index
    %38 = vector.load %arg8[%c0_22, %c0_23, %c0_24] : memref<1x1x128xf32, #tpu.memory_space<vmem>>, vector<1x1x128xf32>
    tpu.vector_store %arg8[%c0_22, %c0_23, %c0_24], %37 {strides = array<i32>} : memref<1x1x128xf32, #tpu.memory_space<vmem>>, vector<1x1x128xf32>,
    return
  }
  func.func @transform_0(%arg0: i32) -> (i32, i32) {
    %c0_i32 = arith.constant 0 : i32
    %c0_i32_0 = arith.constant 0 : i32
    return %c0_i32, %arg0 : i32, i32
  }
  func.func @transform_1(%arg0: i32) -> (i32, i32) {
    %c0_i32 = arith.constant 0 : i32
    %c0_i32_0 = arith.constant 0 : i32
    %c0_i32_1 = arith.constant 0 : i32
    return %c0_i32, %c0_i32_0 : i32, i32
  }
  func.func @transform_2(%arg0: i32) -> (i32, i32) {
    %c0_i32 = arith.constant 0 : i32
    %c0_i32_0 = arith.constant 0 : i32
    %c0_i32_1 = arith.constant 0 : i32
    return %c0_i32, %c0_i32_0 : i32, i32
  }
  func.func @transform_3(%arg0: i32) -> (i32, i32) {
    %c0_i32 = arith.constant 0 : i32
    %c0_i32_0 = arith.constant 0 : i32
    %c0_i32_1 = arith.constant 0 : i32
    return %c0_i32, %c0_i32_0 : i32, i32
  }
  func.func @transform_4(%arg0: i32) -> (i32, i32) {
    %c0_i32 = arith.constant 0 : i32
    %c0_i32_0 = arith.constant 0 : i32
    return %c0_i32, %arg0 : i32, i32
  }
  func.func @transform_5(%arg0: i32) -> (i32, i32) {
    %c0_i32 = arith.constant 0 : i32
    %c0_i32_0 = arith.constant 0 : i32
    return %c0_i32, %arg0 : i32, i32
  }
  func.func @transform_6(%arg0: i32) -> (i32, i32, i32) {
    %c0_i32 = arith.constant 0 : i32
    %c0_i32_0 = arith.constant 0 : i32
    %c0_i32_1 = arith.constant 0 : i32
    return %arg0, %c0_i32, %c0_i32_0 : i32, i32, i32
  }
  func.func @transform_7(%arg0: i32) -> (i32, i32, i32) {
    %c0_i32 = arith.constant 0 : i32
    %c0_i32_0 = arith.constant 0 : i32
    %c0_i32_1 = arith.constant 0 : i32
    return %arg0, %c0_i32, %c0_i32_0 : i32, i32, i32
  }
}

</mosaic_0001>

<bundles_post_ra>
// kernel: tpu_custom_call.1
= control target key start
LH: loop header
LB: loop body
LE: loop exit
PB: predicated region body
PF: predicated region fallthrough
CT: control target
= control target key end

     0   :  { %s5064_s0 = inlined_call_operand.vmem [shape: f32[4,512], index: 0, kind: input, shape index: {}]   ;;  %s5065_s1 = inlined_call_operand.vmem [shape: f32[128,4], index: 1, kind: input, shape index: {}]   ;;  %s5066_s2 = inlined_call_operand.vmem [shape: f32[4,128], index: 2, kind: input, shape index: {}]   ;;  %s5067_s3 = inlined_call_operand.vmem [shape: f32[128,1], index: 3, kind: input, shape index: {}]   ;;  %s5068_s4 = inlined_call_operand.hbm [shape: f32[4,512], index: 4, kind: output, shape index: {0}]   ;;  %s5069_s5 = inlined_call_operand.hbm [shape: s32[1,512], index: 5, kind: output, shape index: {1}]   ;;  %s5070_s6 = inlined_call_operand.vmem [shape: f32[4,1,1], index: 6, kind: output, shape index: {2}]   ;;  %s5071_s7 = inlined_call_operand.hbm [shape: f32[4,1,128], index: 7, kind: output, shape index: {3}]  }
   0x1   :  { %5081 = sst [smem:[#allocation24_spill]] %s5064_s0 }
   0x2   :  { %5082 = sst [smem:[#allocation25_spill]] %s5065_s1 }
   0x3   :  { %5083 = sst [smem:[#allocation26_spill]] %s5066_s2 }
   0x4   :  { %5084 = sst [smem:[#allocation27_spill]] %s5067_s3 }
   0x5   :  { %13 = vsyncpa [#allocation3], 0 }
   0x6   :  { %15 = vsyncpa [#allocation3 + $0x1], 0 }
   0x7   :  { %16 = vsyncpa [#allocation5], 0 }
   0x8   :  { %18 = vsyncpa [#allocation5 + $0x1], 0  ;;  %s3582_s24 = smov 0   ;;  %s3584_s25 = smov 0  }
   0x9   :  { %s3586_s26 = smov 0   ;;  %s3588_s27 = smov 0  }
   0xa LB: > { %s3603_s28 = sadd.s32 4294967295, %s3533_s27   ;;  %s5080_s29 = sadd.s32 4294967294, %s3533_s27   ;;  %s3533_s27 = sphi %s3588_s27, %s5162_s27   ;;  %s3529_s26 = sphi %s3586_s26, %s5161_s26   ;;  %s3525_s25 = sphi %s3584_s25, %s5160_s25   ;;  %s3521_s24 = sphi %s3582_s24, %s5159_s24  }
   0xb   : > { %s3607_s30 = sadd.s32 1, %s3533_s27   ;;  %s120_s8 = sadd.s32 1, %s3529_s26 }
   0xc   : > { %s117_s9 = ssub.s32 %s3533_s27, %s3607_s30  ;;  %p130_p0 = scmp.ne.s32.totalorder %s3529_s26, %s3525_s25 }
   0xd   : > { %p118_p1 = scmp.eq.s32.totalorder %s117_s9, 0  ;;  %p131_p2 = scmp.eq.s32.totalorder %s3603_s28, 3 }
   0xe   : > { %p136_p3 = scmp.ne.s32.totalorder %s3525_s25, %s3521_s24  ;;  %p137_p4 = scmp.eq.s32.totalorder %s5080_s29, 3 }
   0xf   : > { %s3620_s10 = scalar_select %p118_p1, %s3529_s26, %s120_s8  }
  0x10   : > { %p3622_p5 = por %p131_p2, %p130_p0  ;;  %p3626_p6 = por %p137_p4, %p136_p3 }
  0x11   : > { %p2646_p7 = scmp.ge.s32.totalorder %s3533_s27, 1  ;;  %p249_p8 = scmp.lt.s32.totalorder %s3533_s27, 5 }
  0x13   : > { %p250_p9 = pnand %p2646_p7, %p249_p8 }
  0x15   : > { %253 = sbr.rel (%p250_p9) target bundleno = 928 (0x3a0), region = 36 }
  0x1a   : > { %p291_p10 = scmp.lt.s32.totalorder %s3603_s28, 3  ;;  %vm5074_vm0 = vcmask 1043456   ;;  %s5087_s1 = sld [smem:[#allocation25_spill]]  ;;  %vm316_vm1 = vcmask 31744   ;;  %vm5075_vm2 = vmmov 0  }
  0x1b   : > { %s5088_s0 = sld [smem:[#allocation24_spill]]  ;;  %s4576_s15 = sand.u32 1, %s3525_s25  }
  0x1c   : > { %s3655_s9 = scalar_select %p291_p10, %s3603_s28, 3 }
  0x1d   : > { %s5089_s3 = sld [smem:[#allocation27_spill]]  ;;  %s279_s16 = scalar_lea.vmem [#allocation4], %s4576_s15 }
  0x1e   : > { %s2648_s17 = sshll.u32 %s3655_s9, 2  ;;  %s5143_s2 = sld [smem:[#allocation26_spill]] }
  0x1f   : > { %s2463_s19 = sand.u32 1, %s3603_s28   ;;  %s290_s21 = scalar_lea.vmem [#allocation6], %s4576_s15 }
  0x20   : > { %v300_v0 = vld [vmem:[%s5087_s1] sm:$0xff]  ;;  %v301_v1 = vld [vmem:[%s5087_s1 + $0x8] sm:$0xff]  ;;  %v302_v2 = vld [vmem:[%s5087_s1 + $0x10] sm:$0xff]  ;;  %s2512_s22 = sshll.u32 %s290_s21, 4  ;;  %s2731_s23 = sshll.u32 %s3603_s28, 4  ;;  %s4968_s22 = int_to_ptr.vmem [resolvable:$true] %s2512_s22 }
  0x21   : > { %v318_v3 = vsel %vm316_vm1, %v300_v0, 0  ;;  %v321_v4 = vsel %vm316_vm1, %v301_v1, 0  ;;  %v324_v5 = vsel %vm316_vm1, %v302_v2, 0  ;;  %v303_v6 = vld [vmem:[%s5087_s1 + $0x18] sm:$0xff]  ;;  %v304_v7 = vld [vmem:[%s5087_s1 + $0x20] sm:$0xff]  ;;  %v305_v8 = vld [vmem:[%s5087_s1 + $0x28] sm:$0xff]  ;;  %s3690_s20 = scalar_lea.vmem %s5088_s0, %s2648_s17  ;;  %s4974_s14 = scalar_lea.hbm %s5069_s5, %s2731_s23 }
  0x22   : > { %v3657_v9 = vand.u32 4294901760, %v318_v3  ;;  %v3659_v10 = vand.u32 4294901760, %v321_v4  ;;  %v3661_v11 = vand.u32 4294901760, %v324_v5  ;;  %v327_v12 = vsel %vm316_vm1, %v303_v6, 0  ;;  %v306_v13 = vld [vmem:[%s5087_s1 + $0x30] sm:$0xff]  ;;  %v307_v18 = vld [vmem:[%s5087_s1 + $0x38] sm:$0xff]  ;;  %s4981_s0 = scalar_lea.hbm %s5071_s7, %s2731_s23 }
  0x23   : > { %v3667_v14 = vand.u32 4294901760, %v327_v12  ;;  %v330_v15 = vsel %vm316_vm1, %v304_v7, 0  ;;  %v333_v16 = vsel %vm316_vm1, %v305_v8, 0  ;;  %v336_v17 = vsel %vm316_vm1, %v306_v13, 0  ;;  %v298_v27 = vld [vmem:[%s3690_s20] sm:$0xf] }
  0x24   : > { %v3677_v19 = vsub.f32 %v318_v3, %v3657_v9  ;;  %v3680_v20 = vsub.f32 %v321_v4, %v3659_v10  ;;  %v3683_v21 = vsub.f32 %v324_v5, %v3661_v11  ;;  %v3685_v22 = vand.u32 4294901760, %v330_v15  ;;  %v308_v44 = vld [vmem:[%s5087_s1 + $0x40] sm:$0xff]  ;;  %v309_v45 = vld [vmem:[%s5087_s1 + $0x48] sm:$0xff]  ;;  %v310_v54 = vld [vmem:[%s5087_s1 + $0x50] sm:$0xff]  ;;  %s2647_s17 = sshll.u32 %s4576_s15, 2 }
  0x25   : > { %v3693_v23 = vsub.f32 %v327_v12, %v3667_v14  ;;  %v3695_v24 = vand.u32 4294901760, %v333_v16  ;;  %v3697_v25 = vand.u32 4294901760, %v336_v17  ;;  %v339_v26 = vsel %vm316_vm1, %v307_v18, 0  ;;  %v311_v59 = vld [vmem:[%s5087_s1 + $0x58] sm:$0xff]  ;;  %v312_v60 = vld [vmem:[%s5087_s1 + $0x60] sm:$0xff]  ;;  %v313_v5 = vld [vmem:[%s5087_s1 + $0x68] sm:$0xff] }
  0x26   : > { %v437_v28 = vand.u32 4294901760, %v3677_v19  ;;  %v447_v29 = vand.u32 4294901760, %v3680_v20  ;;  %v457_v30 = vand.u32 4294901760, %v3683_v21  ;;  %v3705_v31 = vsub.f32 %v330_v15, %v3685_v22  ;;  %3010 = vmatprep.mubr.f32.mxu0 %v3677_v19  ;;  %s4961_s18 = scalar_lea.vmem [#allocation2], %s2647_s17 }
  0x27   : > { %v299_v32 = vmul.f32 -2.0, %v298_v27  ;;  %v467_v33 = vand.u32 4294901760, %v3693_v23  ;;  %v3710_v34 = vsub.f32 %v333_v16, %v3695_v24  ;;  %v3713_v35 = vsub.f32 %v336_v17, %v3697_v25 }
  0x28   : > { %v438_v36 = vsub.f32 %v3677_v19, %v437_v28  ;;  %v448_v37 = vsub.f32 %v3680_v20, %v447_v29  ;;  %v458_v38 = vsub.f32 %v3683_v21, %v457_v30  ;;  %v477_v39 = vand.u32 4294901760, %v3705_v31 }
  0x29   : > { %v367_v40 = vsel %vm5074_vm0, %v299_v32, 0  ;;  %v468_v41 = vsub.f32 %v3693_v23, %v467_v33  ;;  %v487_v42 = vand.u32 4294901760, %v3710_v34  ;;  %v497_v43 = vand.u32 4294901760, %v3713_v35 }
  0x2a   : > { %v3737_v46 = vand.u32 4294901760, %v367_v40  ;;  %v439_v47 = vand.u32 4294901760, %v438_v36  ;;  %v449_v48 = vand.u32 4294901760, %v448_v37  ;;  %v459_v49 = vand.u32 4294901760, %v458_v38  ;;  %v314_v36 = vld [vmem:[%s5087_s1 + $0x70] sm:$0xff] }
  0x2b   : > { %v469_v50 = vand.u32 4294901760, %v468_v41  ;;  %v478_v51 = vsub.f32 %v3705_v31, %v477_v39  ;;  %v488_v52 = vsub.f32 %v3710_v34, %v487_v42  ;;  %v3748_v53 = vsub.f32 %v3713_v35, %v497_v43 }
  0x2c   : > { %2956 = vmatprep.subr.mxu1 %v3737_v46  ;;  %2958 = vmatprep.mubr.f32.mxu1 %v439_v47  ;;  %v627_v55 = vsub.f32 %v367_v40, %v3737_v46  ;;  %v3755_v56 = vand.u32 4294901760, %v339_v26  ;;  %v342_v57 = vsel %vm316_vm1, %v308_v44, 0  ;;  %v345_v58 = vsel %vm316_vm1, %v309_v45, 0 }
  0x2d   : > { %2957 = vmatpush3.msra.mxu1 %v3737_v46  ;;  %v479_v61 = vand.u32 4294901760, %v478_v51  ;;  %v489_v62 = vand.u32 4294901760, %v488_v52  ;;  %v499_v63 = vand.u32 4294901760, %v3748_v53  ;;  %v3767_v0 = vand.u32 4294901760, %v342_v57 }
  0x2e   : > { %2959 = vmatmul.mubr.f32.vlgmr.msra.gmra.mxu1 %v449_v48  ;;  %v628_v1 = vand.u32 4294901760, %v627_v55  ;;  %v3770_v2 = vsub.f32 %v339_v26, %v3755_v56  ;;  %v3772_v3 = vand.u32 4294901760, %v345_v58  ;;  %v348_v4 = vsel %vm316_vm1, %v310_v54, 0  ;;  %3008 = vmatprep.subr.mxu0 %v627_v55 }
  0x2f   : > { %2961 = vmatprep.mubr.f32.mxu1 %v459_v49  ;;  %v3779_v6 = vsub.f32 %v342_v57, %v3767_v0  ;;  %v3781_v7 = vand.u32 4294901760, %v348_v4  ;;  %v351_v8 = vsel %vm316_vm1, %v311_v59, 0  ;;  %v354_v12 = vsel %vm316_vm1, %v312_v60, 0  ;;  %3009 = vmatpush3.msra.mxu0 %v627_v55  ;;  %v315_v49 = vld [vmem:[%s5087_s1 + $0x78] sm:$0xff]  ;;  %s4983_s1 = scalar_lea.sflag [#allocation5], %s2463_s19 }
  0x30   : > { %v629_v13 = vsub.f32 %v627_v55, %v628_v1  ;;  %v507_v15 = vand.u32 4294901760, %v3770_v2  ;;  %v3787_v16 = vsub.f32 %v345_v58, %v3772_v3  ;;  %v3789_v17 = vand.u32 4294901760, %v351_v8  ;;  %3011 = vmatmul.mubr.f32.vlgmr.msra.gmra.mxu0 %v3680_v20  ;;  %3060 = vmatprep.subr.mxu0 %v628_v1 }
  0x31   : > { %v517_v18 = vand.u32 4294901760, %v3779_v6  ;;  %v3794_v26 = vsub.f32 %v348_v4, %v3781_v7  ;;  %v3796_v27 = vand.u32 4294901760, %v354_v12  ;;  %v357_v32 = vsel %vm316_vm1, %v313_v5, 0  ;;  %3013 = vmatprep.mubr.f32.mxu0 %v3683_v21  ;;  %3061 = vmatpush3.msra.mxu0 %v628_v1  ;;  %v1462_v1 = vld [vmem:[%s5089_s3 + $0x10] sm:$0xff]  ;;  %v1460_v4 = vld [vmem:[%s5089_s3] sm:$0xff] }
  0x32   : > { %2962 = vmatmul.mubr.f32.gmra.mxu1 %v469_v50  ;;  %v630_v37 = vand.u32 4294901760, %v629_v13  ;;  %v508_v38 = vsub.f32 %v3770_v2, %v507_v15  ;;  %v527_v40 = vand.u32 4294901760, %v3787_v16  ;;  %v3808_v41 = vsub.f32 %v351_v8, %v3789_v17 }
  0x33   : > { %2964 = vmatprep.mubr.f32.mxu1 %v479_v61  ;;  %v518_v44 = vsub.f32 %v3779_v6, %v517_v18  ;;  %v537_v45 = vand.u32 4294901760, %v3794_v26  ;;  %v3815_v47 = vsub.f32 %v354_v12, %v3796_v27  ;;  %v3817_v48 = vand.u32 4294901760, %v357_v32 }
  0x34   : > { %2982 = vmatprep.subr.mxu1 %v630_v37  ;;  %v360_v50 = vsel %vm316_vm1, %v314_v36, 0  ;;  %3014 = vmatmul.mubr.f32.gmra.mxu0 %v3693_v23  ;;  %v509_v51 = vand.u32 4294901760, %v508_v38  ;;  %v528_v52 = vsub.f32 %v3787_v16, %v527_v40  ;;  %v547_v53 = vand.u32 4294901760, %v3808_v41  ;;  %v1463_v38 = vld [vmem:[%s5089_s3 + $0x18] sm:$0xff] }
  0x35   : > { %2983 = vmatpush3.msra.mxu1 %v630_v37  ;;  %3016 = vmatprep.mubr.f32.mxu0 %v3705_v31  ;;  %v3830_v54 = vsub.f32 %v357_v32, %v3817_v48  ;;  %v3832_v55 = vand.u32 4294901760, %v360_v50  ;;  %v363_v57 = vsel %vm316_vm1, %v315_v49, 0  ;;  %v519_v58 = vand.u32 4294901760, %v518_v44  ;;  %v1461_v44 = vld [vmem:[%s5089_s3 + $0x8] sm:$0xff] }
  0x36   : > { %2965 = vmatmul.mubr.f32.gmra.mxu1 %v489_v62  ;;  %3034 = vmatprep.subr.mxu1 %v3737_v46  ;;  %v538_v59 = vsub.f32 %v3794_v26, %v537_v45  ;;  %v557_v60 = vand.u32 4294901760, %v3815_v47  ;;  %v3840_v61 = vand.u32 4294901760, %v363_v57  ;;  %v529_v5 = vand.u32 4294901760, %v528_v52 }
  0x37   : > { %2967 = vmatprep.mubr.f32.mxu1 %v499_v63  ;;  %v3843_v62 = vsub.f32 %v360_v50, %v3832_v55  ;;  %v3535_v63 = vmov 0   ;;  %v548_v8 = vsub.f32 %v3808_v41, %v547_v53  ;;  %v567_v12 = vand.u32 4294901760, %v3830_v54 }
  0x38   : > { %3017 = vmatmul.mubr.f32.gmra.mxu0 %v3710_v34  ;;  %3415 = vset.pattern.permute.xlu1 %v3535_v63  ;;  %v3858_v13 = vsub.f32 %v363_v57, %v3840_v61  ;;  %v539_v32 = vand.u32 4294901760, %v538_v59  ;;  %v558_v36 = vsub.f32 %v3815_v47, %v557_v60  ;;  %v1464_v59 = vld [vmem:[%s5089_s3 + $0x20] sm:$0xff] }
  0x39   : > { %3019 = vmatprep.mubr.f32.mxu0 %v3713_v35  ;;  %3414 = vset.pattern.permute.xlu0 %v3535_v63  ;;  %v577_v37 = vand.u32 4294901760, %v3843_v62  ;;  %v549_v49 = vand.u32 4294901760, %v548_v8  ;;  %v568_v50 = vsub.f32 %v3830_v54, %v567_v12  ;;  %v1466_v8 = vld [vmem:[%s5089_s3 + $0x30] sm:$0xff] }
  0x3a   : > { %2968 = vmatmul.mubr.f32.gmra.mxu1 %v509_v51  ;;  %1488 = vperm.xlu1 %3415, %v1462_v1   ;;  %v587_v51 = vand.u32 4294901760, %v3858_v13  ;;  %v559_v52 = vand.u32 4294901760, %v558_v36  ;;  %v1469_v36 = vld [vmem:[%s5089_s3 + $0x48] sm:$0xff] }
  0x3b   : > { %2970 = vmatprep.mubr.f32.mxu1 %v519_v58  ;;  %1478 = vperm.xlu0 %3414, %v1460_v4   ;;  %v578_v57 = vsub.f32 %v3843_v62, %v577_v37  ;;  %v1465_v58 = vld [vmem:[%s5089_s3 + $0x28] sm:$0xff]  ;;  %v569_v1 = vand.u32 4294901760, %v568_v50 }
  0x3c   : > { %3020 = vmatmul.mubr.f32.gmra.mxu0 %v3770_v2  ;;  %v588_v63 = vsub.f32 %v3858_v13, %v587_v51  ;;  %v1473_v50 = vld [vmem:[%s5089_s3 + $0x68] sm:$0xff] }
  0x3d   : > { %3022 = vmatprep.mubr.f32.mxu0 %v3779_v6  ;;  %v579_v4 = vand.u32 4294901760, %v578_v57  ;;  %v1475_v57 = vld [vmem:[%s5089_s3 + $0x78] sm:$0xff] }
  0x3e   : > { %2971 = vmatmul.mubr.f32.gmra.mxu1 %v529_v5  ;;  %1493 = vperm.xlu1 %3415, %v1463_v38   ;;  %v1467_v5 = vld [vmem:[%s5089_s3 + $0x38] sm:$0xff]  ;;  %v1468_v38 = vld [vmem:[%s5089_s3 + $0x40] sm:$0xff] }
  0x3f   : > { %2973 = vmatprep.mubr.f32.mxu1 %v539_v32  ;;  %1483 = vperm.xlu0 %3414, %v1461_v44   ;;  %v589_v32 = vand.u32 4294901760, %v588_v63  ;;  %v1471_v44 = vld [vmem:[%s5089_s3 + $0x58] sm:$0xff] }
  0x40   : > { %3023 = vmatmul.mubr.f32.gmra.mxu0 %v3787_v16 }
  0x41   : > { %3025 = vmatprep.mubr.f32.mxu0 %v3794_v26 }
  0x42   : > { %2974 = vmatmul.mubr.f32.gmra.mxu1 %v549_v49  ;;  %1503 = vperm.xlu1 %3415, %v1465_v58   ;;  %v1470_v49 = vld [vmem:[%s5089_s3 + $0x50] sm:$0xff] }
  0x43   : > { %2976 = vmatprep.mubr.f32.mxu1 %v559_v52  ;;  %1498 = vperm.xlu0 %3414, %v1464_v59   ;;  %v1472_v52 = vld [vmem:[%s5089_s3 + $0x60] sm:$0xff]  ;;  %v1474_v58 = vld [vmem:[%s5089_s3 + $0x70] sm:$0xff] }
  0x44   : > { %3026 = vmatmul.mubr.f32.gmra.mxu0 %v3808_v41 }
  0x45   : > { %3028 = vmatprep.mubr.f32.mxu0 %v3815_v47 }
  0x46   : > { %2977 = vmatmul.mubr.f32.gmra.mxu1 %v569_v1  ;;  %1513 = vperm.xlu1 %3415, %v1467_v5  }
  0x47   : > { %2979 = vmatprep.mubr.f32.mxu1 %v579_v4  ;;  %1508 = vperm.xlu0 %3414, %v1466_v8  }
  0x48   : > { %3029 = vmatmul.mubr.f32.gmra.mxu0 %v3830_v54 }
  0x49   : > { %3031 = vmatprep.mubr.f32.mxu0 %v3843_v62 }
  0x4a   : > { %2980 = vmatmul.mubr.f32.gmra.mxu1 %v589_v32  ;;  %1523 = vperm.xlu1 %3415, %v1469_v36  }
  0x4b   : > { %2984 = vmatprep.mubr.f32.mxu1 %v3657_v9  ;;  %1518 = vperm.xlu0 %3414, %v1468_v38  }
  0x4c   : > { %3032 = vmatmul.mubr.f32.gmra.mxu0 %v3858_v13 }
  0x4d   : > { %3062 = vmatprep.mubr.f32.mxu0 %v3657_v9 }
  0x4e   : > { %2985 = vmatmul.mubr.f32.vlgmr.msra.gmra.mxu1 %v3659_v10  ;;  %1533 = vperm.xlu1 %3415, %v1471_v44  }
  0x4f   : > { %2987 = vmatprep.mubr.f32.mxu1 %v3661_v11  ;;  %3035 = vmatpush3.msra.mxu1 %v3737_v46 }
  0x50   : > { %3063 = vmatmul.mubr.f32.vlgmr.msra.gmra.mxu0 %v3659_v10  ;;  %3086 = vmatprep.subr.mxu1 %v3737_v46 }
  0x51   : > { %3065 = vmatprep.mubr.f32.mxu0 %v3661_v11  ;;  %1528 = vperm.xlu0 %3414, %v1470_v49  }
  0x52   : > { %2988 = vmatmul.mubr.f32.gmra.mxu1 %v3667_v14  ;;  %1543 = vperm.xlu1 %3415, %v1473_v50  }
  0x53   : > { %2990 = vmatprep.mubr.f32.mxu1 %v3685_v22 }
  0x54   : > { %3066 = vmatmul.mubr.f32.gmra.mxu0 %v3667_v14 }
  0x55   : > { %3068 = vmatprep.mubr.f32.mxu0 %v3685_v22  ;;  %1538 = vperm.xlu0 %3414, %v1472_v52  }
  0x56   : > { %2991 = vmatmul.mubr.f32.gmra.mxu1 %v3695_v24  ;;  %1553 = vperm.xlu1 %3415, %v1475_v57  }
  0x57   : > { %2993 = vmatprep.mubr.f32.mxu1 %v3697_v25 }
  0x58   : > { %3069 = vmatmul.mubr.f32.gmra.mxu0 %v3695_v24 }
  0x59   : > { %3071 = vmatprep.mubr.f32.mxu0 %v3697_v25  ;;  %1548 = vperm.xlu0 %3414, %v1474_v58  }
  0x5a   : > { %2994 = vmatmul.mubr.f32.gmra.mxu1 %v3755_v56 }
  0x5b   : > { %2996 = vmatprep.mubr.f32.mxu1 %v3767_v0 }
  0x5c   : > { %3072 = vmatmul.mubr.f32.gmra.mxu0 %v3755_v56 }
  0x5d   : > { %3074 = vmatprep.mubr.f32.mxu0 %v3767_v0 }
  0x5e   : > { %2997 = vmatmul.mubr.f32.gmra.mxu1 %v3772_v3 }
  0x5f   : > { %2999 = vmatprep.mubr.f32.mxu1 %v3781_v7 }
  0x60   : > { %3075 = vmatmul.mubr.f32.gmra.mxu0 %v3772_v3 }
  0x61   : > { %3077 = vmatprep.mubr.f32.mxu0 %v3781_v7 }
  0x62   : > { %3000 = vmatmul.mubr.f32.gmra.mxu1 %v3789_v17 }
  0x63   : > { %3002 = vmatprep.mubr.f32.mxu1 %v3796_v27 }
  0x64   : > { %3078 = vmatmul.mubr.f32.gmra.mxu0 %v3789_v17 }
  0x65   : > { %3080 = vmatprep.mubr.f32.mxu0 %v3796_v27 }
  0x66   : > { %3003 = vmatmul.mubr.f32.gmra.mxu1 %v3817_v48 }
  0x67   : > { %3005 = vmatprep.mubr.f32.mxu1 %v3832_v55 }
  0x68   : > { %3081 = vmatmul.mubr.f32.gmra.mxu0 %v3817_v48 }
  0x69   : > { %3083 = vmatprep.mubr.f32.mxu0 %v3832_v55 }
  0x6a   : > { %3006 = vmatmul.mubr.f32.gmra.mxu1 %v3840_v61 }
  0x6b   : > { %3036 = vmatprep.mubr.f32.mxu1 %v437_v28 }
  0x6c   : > { %3084 = vmatmul.mubr.f32.gmra.mxu0 %v3840_v61 }
  0x6e   : > { %3037 = vmatmul.mubr.f32.vlgmr.msra.gmra.mxu1 %v447_v29 }
  0x6f   : > { %3039 = vmatprep.mubr.f32.mxu1 %v457_v30  ;;  %3087 = vmatpush3.msra.mxu1 %v3737_v46 }
  0x72   : > { %3040 = vmatmul.mubr.f32.gmra.mxu1 %v467_v33 }
  0x73   : > { %3042 = vmatprep.mubr.f32.mxu1 %v477_v39 }
  0x76   : > { %3043 = vmatmul.mubr.f32.gmra.mxu1 %v487_v42 }
  0x77   : > { %3045 = vmatprep.mubr.f32.mxu1 %v497_v43 }
  0x7a   : > { %3046 = vmatmul.mubr.f32.gmra.mxu1 %v507_v15 }
  0x7b   : > { %3048 = vmatprep.mubr.f32.mxu1 %v517_v18 }
  0x7e   : > { %3049 = vmatmul.mubr.f32.gmra.mxu1 %v527_v40 }
  0x7f   : > { %3051 = vmatprep.mubr.f32.mxu1 %v537_v45 }
  0x82   : > { %3052 = vmatmul.mubr.f32.gmra.mxu1 %v547_v53 }
  0x83   : > { %3054 = vmatprep.mubr.f32.mxu1 %v557_v60 }
  0x86   : > { %3055 = vmatmul.mubr.f32.gmra.mxu1 %v567_v12 }
  0x87   : > { %3057 = vmatprep.mubr.f32.mxu1 %v577_v37 }
  0x8a   : > { %3058 = vmatmul.mubr.f32.gmra.mxu1 %v587_v51 }
  0x8b   : > { %3088 = vmatprep.mubr.f32.mxu1 %v3657_v9 }
  0x8e   : > { %3089 = vmatmul.mubr.f32.vlgmr.msra.gmra.mxu1 %v3659_v10 }
  0x8f   : > { %3091 = vmatprep.mubr.f32.mxu1 %v3661_v11 }
  0x92   : > { %3092 = vmatmul.mubr.f32.gmra.mxu1 %v3667_v14 }
  0x93   : > { %3094 = vmatprep.mubr.f32.mxu1 %v3685_v22 }
  0x96   : > { %3095 = vmatmul.mubr.f32.gmra.mxu1 %v3695_v24 }
  0x97   : > { %3097 = vmatprep.mubr.f32.mxu1 %v3697_v25 }
  0x9a   : > { %3098 = vmatmul.mubr.f32.gmra.mxu1 %v3755_v56 }
  0x9b   : > { %3100 = vmatprep.mubr.f32.mxu1 %v3767_v0  ;;  %v5072_v0 = vmov 0.0  }
  0x9c   : > { %3112 = vmatprep.subr.mxu0 %v5072_v0  ;;  %3147 = vmatprep.subr.mxu1 %v5072_v0 }
  0x9d   : > { %3144 = vmatprep.mubr.msk.f32.mxu0 %vm5075_vm2, %v5072_v0 }
  0x9e   : > { %3101 = vmatmul.mubr.f32.gmra.mxu1 %v3772_v3 }
  0x9f   : > { %3103 = vmatprep.mubr.f32.mxu1 %v3781_v7 }
  0xa2   : > { %3104 = vmatmul.mubr.f32.gmra.mxu1 %v3789_v17 }
  0xa3   : > { %3106 = vmatprep.mubr.f32.mxu1 %v3796_v27 }
  0xa6   : > { %3107 = vmatmul.mubr.f32.gmra.mxu1 %v3817_v48 }
  0xa7   : > { %3109 = vmatprep.mubr.f32.mxu1 %v3832_v55 }
  0xaa   : > { %3110 = vmatmul.mubr.f32.gmra.mxu1 %v3840_v61 }
  0xab   : > { %3179 = vmatprep.mubr.msk.f32.mxu1 %vm5075_vm2, %v5072_v0 }
  0xee   : > { %v2960_v9 = vpop.f32.mrf.mxu1 }
  0xf0   : > { %v441_v10 = vpop.f32.mrf.mxu1  ;;  %v4008_v11 = vpop.f32.mrf.mxu0 }
  0xf2   : > { %v2963_v14 = vpop.f32.mrf.mxu1  ;;  %v4010_v19 = vpop.f32.mrf.mxu0 }
  0xf4   : > { %v461_v20 = vpop.f32.mrf.mxu1  ;;  %v4012_v21 = vpop.f32.mrf.mxu0 }
  0xf6   : > { %v2966_v22 = vpop.f32.mrf.mxu1  ;;  %v4014_v24 = vpop.f32.mrf.mxu0 }
  0xf8   : > { %v481_v23 = vpop.f32.mrf.mxu1  ;;  %v4016_v29 = vpop.f32.mrf.mxu0 }
  0xfa   : > { %v2969_v25 = vpop.f32.mrf.mxu1  ;;  %v4018_v33 = vpop.f32.mrf.mxu0 }
  0xfc   : > { %v501_v28 = vpop.f32.mrf.mxu1  ;;  %v4022_v39 = vpop.f32.mrf.mxu0 }
  0xfe   : > { %v2972_v30 = vpop.f32.mrf.mxu1  ;;  %v4028_v46 = vpop.f32.mrf.mxu0 }
 0x100   : > { %v521_v31 = vpop.f32.mrf.mxu1  ;;  %v4036_v3 = vpop.f32.mrf.mxu0 }
 0x102   : > { %v2975_v34 = vpop.f32.mrf.mxu1  ;;  %v4040_v16 = vpop.f32.mrf.mxu0 }
 0x104   : > { %v4020_v35 = vpop.f32.mrf.mxu1  ;;  %v4046_v40 = vpop.f32.mrf.mxu0 }
 0x106   : > { %v4024_v42 = vpop.f32.mrf.mxu1  ;;  %v4050_v53 = vpop.f32.mrf.mxu0 }
 0x108   : > { %v4026_v43 = vpop.f32.mrf.mxu1  ;;  %v4056_v62 = vpop.f32.mrf.mxu0 }
 0x109   : > { %5092 = vst [vmem:[#allocation11_spill] sm:$0xff] %v4056_v62 }
 0x10a   : > { %v4030_v56 = vpop.f32.mrf.mxu1  ;;  %v4062_v59 = vpop.f32.mrf.mxu0 }
 0x10b   : > { %5090 = vst [vmem:[#allocation9_spill] sm:$0xff] %v4030_v56  ;;  %5093 = vst [vmem:[#allocation12_spill] sm:$0xff] %v4062_v59 }
 0x10c   : > { %v4034_v2 = vpop.f32.mrf.mxu1  ;;  %v4070_v8 = vpop.f32.mrf.mxu0 }
 0x10d   : > { %5091 = vst [vmem:[#allocation10_spill] sm:$0xff] %v4034_v2  ;;  %5094 = vst [vmem:[#allocation13_spill] sm:$0xff] %v4070_v8 }
 0x10e   : > { %v2986_v6 = vpop.f32.mrf.mxu1  ;;  %v4076_v38 = vpop.f32.mrf.mxu0 }
 0x10f   : > { %v4038_v7 = vadd.f32 %v2986_v6, %v2960_v9  ;;  %5095 = vst [vmem:[#allocation14_spill] sm:$0xff] %v4076_v38 }
 0x110   : > { %v667_v15 = vpop.f32.mrf.mxu1  ;;  %v3064_v50 = vpop.f32.mrf.mxu0 }
 0x111   : > { %v4042_v17 = vadd.f32 %v667_v15, %v441_v10  ;;  %v4086_v15 = vpop.permute.xlu1 %1488  ;;  %v839_v0 = vadd.f32 %v4008_v11, %v4038_v7 }
 0x112   : > { %v2989_v18 = vpop.f32.mrf.mxu1  ;;  %v1204_v58 = vpop.f32.mrf.mxu0  ;;  %5098 = vst [vmem:[#allocation17_spill] sm:$0xff] %v4086_v15 }
 0x113   : > { %v4044_v26 = vadd.f32 %v2989_v18, %v2963_v14  ;;  %v832_v59 = vadd.f32 %v4010_v19, %v4042_v17 }
 0x114   : > { %v679_v27 = vpop.f32.mrf.mxu1  ;;  %v3067_v14 = vpop.f32.mrf.mxu0 }
 0x115   : > { %v4048_v41 = vadd.f32 %v679_v27, %v461_v20  ;;  %v4094_v27 = vpop.permute.xlu0 %1478  ;;  %v853_v62 = vadd.f32 %v4012_v21, %v4044_v26 }
 0x116   : > { %v2992_v45 = vpop.f32.mrf.mxu1 }
 0x117   : > { %v698_v47 = vadd.f32 %v2992_v45, %v2966_v22  ;;  %v4082_v22 = vpop.f32.mrf.mxu0  ;;  %v846_v7 = vadd.f32 %v4014_v24, %v4048_v41 }
 0x118   : > { %v691_v48 = vpop.f32.mrf.mxu1 }
 0x119   : > { %v4052_v54 = vadd.f32 %v691_v48, %v481_v23  ;;  %v867_v15 = vadd.f32 %v4016_v29, %v698_v47 }
 0x11a   : > { %v2995_v55 = vpop.f32.mrf.mxu1 }
 0x11b   : > { %v4054_v60 = vadd.f32 %v2995_v55, %v2969_v25 }
 0x11c   : > { %v703_v61 = vpop.f32.mrf.mxu1 }
 0x11d   : > { %v4058_v12 = vadd.f32 %v703_v61, %v501_v28  ;;  %v3070_v28 = vpop.f32.mrf.mxu0  ;;  %v4100_v61 = vpop.permute.xlu1 %1493  ;;  %v881_v19 = vadd.f32 %v4022_v39, %v4054_v60 }
 0x11e   : > { %v2998_v13 = vpop.f32.mrf.mxu1 }
 0x11f   : > { %v4060_v37 = vadd.f32 %v2998_v13, %v2972_v30 }
 0x120   : > { %v715_v51 = vpop.f32.mrf.mxu1 }
 0x121   : > { %v4064_v1 = vadd.f32 %v715_v51, %v521_v31  ;;  %v1504_v2 = vpop.permute.xlu1 %1503  ;;  %v895_v24 = vadd.f32 %v4036_v3, %v4060_v37 }
 0x122   : > { %v3001_v63 = vpop.f32.mrf.mxu1 }
 0x123   : > { %v4066_v4 = vadd.f32 %v3001_v63, %v2975_v34  ;;  %v1228_v34 = vpop.f32.mrf.mxu0  ;;  %v1484_v63 = vpop.permute.xlu0 %1483  ;;  %v888_v39 = vadd.f32 %v4040_v16, %v4064_v1 }
 0x124   : > { %v4068_v5 = vpop.f32.mrf.mxu1 }
 0x125   : > { %v3073_v45 = vpop.f32.mrf.mxu0 }
 0x126   : > { %v4072_v32 = vpop.f32.mrf.mxu1 }
 0x127   : > { %v1240_v13 = vpop.f32.mrf.mxu0 }
 0x128   : > { %v4074_v36 = vpop.f32.mrf.mxu1 }
 0x129   : > { %v4106_v8 = vpop.f32.mrf.mxu0 }
 0x12a   : > { %v4078_v44 = vpop.f32.mrf.mxu1 }
 0x12b   : > { %5096 = vst [vmem:[#allocation15_spill] sm:$0xff] %v4078_v44  ;;  %v1499_v44 = vpop.permute.xlu0 %1498  ;;  %v4115_v56 = vpop.f32.mrf.mxu0 }
 0x12c   : > { %v4080_v49 = vpop.f32.mrf.mxu1  ;;  %5104 = vst [vmem:[#allocation23_spill] sm:$0xff] %v4115_v56 }
 0x12d   : > { %5097 = vst [vmem:[#allocation16_spill] sm:$0xff] %v4080_v49  ;;  %v3079_v56 = vpop.f32.mrf.mxu0 }
 0x12e   : > { %v3038_v52 = vpop.f32.mrf.mxu1 }
 0x12f   : > { %v1264_v3 = vpop.f32.mrf.mxu0 }
 0x130   : > { %v1010_v57 = vpop.f32.mrf.mxu1 }
 0x132   : > { %v3041_v9 = vpop.f32.mrf.mxu1 }
 0x133   : > { %v1035_v17 = vadd.f32 %v3041_v9, %v853_v62 }
 0x134   : > { %v1026_v10 = vpop.f32.mrf.mxu1 }
 0x135   : > { %v1027_v21 = vadd.f32 %v1026_v10, %v846_v7  ;;  %v5107_v7 = vld [vmem:[#allocation15_spill] sm:$0xff] }
 0x136   : > { %v3044_v20 = vpop.f32.mrf.mxu1 }
 0x137   : > { %v1051_v11 = vadd.f32 %v3044_v20, %v867_v15  ;;  %v1509_v20 = vpop.permute.xlu0 %1508  ;;  %v1217_v9 = vadd.f32 %v4082_v22, %v1027_v21 }
 0x138   : > { %v1042_v23 = vpop.f32.mrf.mxu1 }
 0x13a   : > { %v3047_v25 = vpop.f32.mrf.mxu1 }
 0x13b   : > { %v1067_v26 = vadd.f32 %v3047_v25, %v881_v19  ;;  %v1519_v22 = vpop.permute.xlu0 %1518 }
 0x13c   : > { %v1058_v30 = vpop.f32.mrf.mxu1 }
 0x13d   : > { %v1247_v10 = vadd.f32 %v3073_v45, %v1067_v26  ;;  %v5112_v26 = vld [vmem:[#allocation10_spill] sm:$0xff] }
 0x13e   : > { %v3050_v31 = vpop.f32.mrf.mxu1 }
 0x140   : > { %v4084_v6 = vpop.f32.mrf.mxu1 }
 0x142   : > { %v4088_v18 = vpop.f32.mrf.mxu1 }
 0x144   : > { %v4096_v48 = vpop.f32.mrf.mxu1 }
 0x145   : > { %5099 = vst [vmem:[#allocation18_spill] sm:$0xff] %v4096_v48  ;;  %v1019_v48 = vadd.f32 %v3038_v52, %v839_v0  ;;  %v874_v52 = vadd.f32 %v4028_v46, %v4058_v12  ;;  %v728_v46 = vadd.f32 %v4068_v5, %v4020_v35  ;;  %v1223_v12 = vadd.f32 %v3067_v14, %v1035_v17  ;;  %v5110_v17 = vld [vmem:[#allocation17_spill] sm:$0xff] }
 0x146   : > { %v4098_v55 = vpop.f32.mrf.mxu1  ;;  %v746_v35 = vadd.f32 %v4072_v32, %v4024_v42  ;;  %v1075_v14 = vadd.f32 %v4084_v6, %v888_v39  ;;  %v740_v42 = vadd.f32 %v4074_v36, %v4026_v43  ;;  %v5108_v36 = vld [vmem:[#allocation23_spill] sm:$0xff] }
 0x147   : > { %5100 = vst [vmem:[#allocation19_spill] sm:$0xff] %v4098_v55  ;;  %v1211_v0 = vadd.f32 %v3064_v50, %v1019_v48  ;;  %v1059_v41 = vadd.f32 %v1058_v30, %v874_v52  ;;  %v902_v45 = vadd.f32 %v4050_v53, %v728_v46 }
 0x148   : > { %v4102_v51 = vpop.f32.mrf.mxu1 }
 0x149   : > { %5101 = vst [vmem:[#allocation20_spill] sm:$0xff] %v4102_v51  ;;  %v1011_v51 = vadd.f32 %v1010_v57, %v832_v59  ;;  %v1514_v59 = vpop.permute.xlu1 %1513  ;;  %v1241_v5 = vadd.f32 %v1240_v13, %v1059_v41 }
 0x14a   : > { %v4104_v38 = vpop.f32.mrf.mxu1 }
 0x14b   : > { %5102 = vst [vmem:[#allocation21_spill] sm:$0xff] %v4104_v38  ;;  %v1205_v57 = vadd.f32 %v1204_v58, %v1011_v51  ;;  %v909_v58 = vadd.f32 %v4046_v40, %v4066_v4 }
 0x14c   : > { %v4108_v49 = vpop.f32.mrf.mxu1  ;;  %v5109_v19 = vld [vmem:[#allocation18_spill] sm:$0xff] }
 0x14d   : > { %5103 = vst [vmem:[#allocation22_spill] sm:$0xff] %v4108_v49  ;;  %v860_v49 = vadd.f32 %v4018_v33, %v4052_v54  ;;  %v1235_v54 = vadd.f32 %v3070_v28, %v1051_v11  ;;  %v1524_v25 = vpop.permute.xlu1 %1523  ;;  %v1099_v6 = vadd.f32 %v4088_v18, %v909_v58  ;;  %v5106_v11 = vld [vmem:[#allocation9_spill] sm:$0xff]  ;;  %v1091_v18 = vadd.f32 %v5109_v19, %v902_v45 }
 0x14e   : > { %v3090_v55 = vpop.f32.mrf.mxu1  ;;  %v758_v43 = vadd.f32 %v5107_v7, %v5106_v11 }
 0x14f   : > { %v1043_v47 = vadd.f32 %v1042_v23, %v860_v49  ;;  %v1373_v15 = vadd.f32 %v3090_v55, %v1211_v0  ;;  %v1083_v23 = vadd.f32 %v3050_v31, %v895_v24 }
 0x150   : > { %v1366_v38 = vpop.f32.mrf.mxu1  ;;  %v5116_v58 = vld [vmem:[#allocation20_spill] sm:$0xff] }
 0x151   : > { %v1367_v60 = vadd.f32 %v1366_v38, %v1205_v57  ;;  %v1229_v49 = vadd.f32 %v1228_v34, %v1043_v47  ;;  %v4136_v16 = vadd.f32 %v1484_v63, %v1373_v15  ;;  %v1259_v32 = vadd.f32 %v4106_v8, %v1083_v23  ;;  %v5105_v63 = vld [vmem:[#allocation11_spill] sm:$0xff]  ;;  %v1534_v0 = vpop.permute.xlu1 %1533  ;;  %v5111_v57 = vld [vmem:[#allocation12_spill] sm:$0xff] }
 0x152   : > { %v3093_v29 = vpop.f32.mrf.mxu1  ;;  %v923_v53 = vadd.f32 %v5105_v63, %v746_v35  ;;  %v1253_v8 = vadd.f32 %v5108_v36, %v1075_v14  ;;  %v916_v21 = vadd.f32 %v5111_v57, %v740_v42  ;;  %v5114_v15 = vld [vmem:[#allocation19_spill] sm:$0xff]  ;;  %v1265_v23 = vadd.f32 %v1264_v3, %v1091_v18  ;;  %v5117_v35 = vld [vmem:[#allocation14_spill] sm:$0xff] }
 0x153   : > { %v1385_v1 = vadd.f32 %v3093_v29, %v1223_v12  ;;  %v4144_v40 = vadd.f32 %v4094_v27, %v1367_v60  ;;  %v3082_v27 = vpop.f32.mrf.mxu0  ;;  %v1271_v60 = vadd.f32 %v3079_v56, %v1099_v6 }
 0x154   : > { %v1378_v33 = vpop.f32.mrf.mxu1  ;;  %v1115_v24 = vadd.f32 %v5114_v15, %v923_v53 }
 0x155   : > { %v1379_v30 = vadd.f32 %v1378_v33, %v1217_v9  ;;  %v4156_v55 = vadd.f32 %v4100_v61, %v1385_v1  ;;  %v5113_v33 = vld [vmem:[#allocation16_spill] sm:$0xff]  ;;  %v1276_v39 = vpop.f32.mrf.mxu0  ;;  %v1107_v9 = vadd.f32 %v5116_v58, %v916_v21  ;;  %v1544_v6 = vpop.permute.xlu1 %1543 }
 0x156   : > { %v3096_v62 = vpop.f32.mrf.mxu1 }
 0x157   : > { %v1397_v50 = vadd.f32 %v3096_v62, %v1235_v54  ;;  %v4168_v61 = vadd.f32 %v5110_v17, %v1379_v30  ;;  %v752_v54 = vadd.f32 %v5113_v33, %v5112_v26  ;;  %v1529_v62 = vpop.permute.xlu0 %1528  ;;  %v3085_v14 = vpop.f32.mrf.mxu0  ;;  %v5118_v30 = vld [vmem:[#allocation21_spill] sm:$0xff] }
 0x158   : > { %v1390_v37 = vpop.f32.mrf.mxu1 }
 0x159   : > { %v4138_v38 = vadd.f32 %v1504_v2, %v1397_v50  ;;  %v1391_v28 = vadd.f32 %v1390_v37, %v1229_v49  ;;  %v930_v56 = vadd.f32 %v5117_v35, %v752_v54  ;;  %v1288_v53 = vpop.f32.mrf.mxu0  ;;  %v1554_v17 = vpop.permute.xlu1 %1553 }
 0x15a   : > { %v3099_v4 = vpop.f32.mrf.mxu1 }
 0x15b   : > { %v1573_v31 = vmin.f32 %v4136_v16, %v4138_v38  ;;  %v4148_v34 = vadd.f32 %v1499_v44, %v1391_v28  ;;  %v1409_v2 = vadd.f32 %v3099_v4, %v1247_v10 }
 0x15c   : > { %v1402_v48 = vpop.f32.mrf.mxu1 }
 0x15d   : > { %v1572_v13 = vmin.f32 %v4144_v40, %v4148_v34  ;;  %v4160_v44 = vadd.f32 %v1514_v59, %v1409_v2  ;;  %v1403_v51 = vadd.f32 %v1402_v48, %v1241_v5  ;;  %v1283_v5 = vadd.f32 %v3082_v27, %v1115_v24  ;;  %v5119_v48 = vld [vmem:[#allocation22_spill] sm:$0xff] }
 0x15e   : > { %v3102_v29 = vpop.f32.mrf.mxu1 }
 0x15f   : > { %v1575_v47 = vmin.f32 %v4156_v55, %v4160_v44  ;;  %v4172_v59 = vadd.f32 %v1509_v20, %v1403_v51  ;;  %v1421_v52 = vadd.f32 %v3102_v29, %v1259_v32  ;;  %v5115_v20 = vld [vmem:[#allocation13_spill] sm:$0xff]  ;;  %v1277_v32 = vadd.f32 %v1276_v39, %v1107_v9 }
 0x160   : > { %v1414_v41 = vpop.f32.mrf.mxu1  ;;  %v937_v50 = vadd.f32 %v5115_v20, %v758_v43  ;;  %v1593_v39 = vlaneseq }
 0x161   : > { %v1574_v46 = vmin.f32 %v4168_v61, %v4172_v59  ;;  %v4180_v12 = vadd.f32 %v1524_v25, %v1421_v52  ;;  %v1415_v49 = vadd.f32 %v1414_v41, %v1253_v8 }
 0x162   : > { %v3105_v10 = vpop.f32.mrf.mxu1  ;;  %v1131_v25 = vadd.f32 %v5118_v30, %v937_v50 }
 0x163   : > { %v1577_v37 = vmin.f32 %v1573_v31, %v4180_v12  ;;  %v4185_v1 = vadd.f32 %v1519_v22, %v1415_v49  ;;  %v1433_v28 = vadd.f32 %v3105_v10, %v1271_v60  ;;  %v1123_v31 = vadd.f32 %v5119_v48, %v930_v56  ;;  %v1539_v22 = vpop.permute.xlu0 %1538 }
 0x164   : > { %v1426_v4 = vpop.f32.mrf.mxu1  ;;  %v1295_v7 = vadd.f32 %v3085_v14, %v1131_v25 }
 0x165   : > { %v1576_v2 = vmin.f32 %v1572_v13, %v4185_v1  ;;  %v4190_v45 = vadd.f32 %v1534_v0, %v1433_v28  ;;  %v1427_v42 = vadd.f32 %v1426_v4, %v1265_v23  ;;  %v1289_v19 = vadd.f32 %v1288_v53, %v1123_v31 }
 0x166   : > { %v3108_v3 = vpop.f32.mrf.mxu1 }
 0x167   : > { %v1579_v51 = vmin.f32 %v1575_v47, %v4190_v45  ;;  %v4194_v63 = vadd.f32 %v1529_v62, %v1427_v42  ;;  %v1445_v27 = vadd.f32 %v3108_v3, %v1283_v5  ;;  %v1549_v26 = vpop.permute.xlu0 %1548  ;;  %v4206_v62 = vshrl.u32 %v1593_v39, 7 }
 0x168   : > { %v1438_v11 = vpop.f32.mrf.mxu1 }
 0x169   : > { %v1578_v43 = vmin.f32 %v1574_v46, %v4194_v63  ;;  %v4197_v13 = vadd.f32 %v1544_v6, %v1445_v27  ;;  %v1439_v36 = vadd.f32 %v1438_v11, %v1277_v32  ;;  %v4209_v20 = vadd.s32 16, %v4206_v62 }
 0x16a   : > { %v3111_v8 = vpop.f32.mrf.mxu1  ;;  %v4212_v50 = vadd.s32 48, %v4206_v62  ;;  %v4215_v9 = vadd.s32 80, %v4206_v62  ;;  %v4218_v10 = vadd.s32 112, %v4206_v62  ;;  %v4221_v23 = vadd.s32 8, %v4206_v62 }
 0x16b   : > { %v1581_v18 = vmin.f32 %v1577_v37, %v4197_v13  ;;  %v4200_v29 = vadd.f32 %v1539_v22, %v1439_v36  ;;  %v1457_v0 = vadd.f32 %v3111_v8, %v1295_v7  ;;  %v4224_v37 = vadd.s32 24, %v4206_v62 }
 0x16c   : > { %v1450_v47 = vpop.f32.mrf.mxu1  ;;  %v4227_v28 = vadd.s32 32, %v4206_v62  ;;  %v1612_v56 = vcvt.s32.f32 %v4209_v20  ;;  %v1616_v5 = vcvt.s32.f32 %v4212_v50  ;;  %v4232_v14 = vadd.s32 40, %v4206_v62  ;;  %v1727_v50 = vld [vmem:[%s5143_s2] sm:$0xf]  ;;  %s3539_s2 = smov [#allocation4]  }
 0x16d   : > { %v1580_v52 = vmin.f32 %v1576_v2, %v4200_v29  ;;  %v4203_v57 = vadd.f32 %v1554_v17, %v1457_v0  ;;  %v1451_v21 = vadd.f32 %v1450_v47, %v1289_v19  ;;  %v4235_v4 = vadd.s32 56, %v4206_v62  ;;  %s3421_s3 = sshll.u32 %s3539_s2, 4  ;;  %s3422_s3 = int_to_ptr.vmem [resolvable:$false] %s3421_s3 }
 0x16e   : > { %v4238_v30 = vadd.s32 64, %v4206_v62  ;;  %v4241_v25 = vadd.s32 72, %v4206_v62  ;;  %v4244_v2 = vadd.s32 88, %v4206_v62  ;;  %v1620_v32 = vcvt.s32.f32 %v4215_v9  ;;  %s3423_s8 = scalar_lea.vmem %s3422_s3, 32 }
 0x16f   : > { %v1584_v33 = vmin.f32 %v1580_v52, %v1581_v18  ;;  %v1583_v54 = vmin.f32 %v1579_v51, %v4203_v57  ;;  %v1570_v15 = vadd.f32 %v1549_v26, %v1451_v21  ;;  %v1624_v6 = vcvt.s32.f32 %v4218_v10 }
 0x170   : > { %v4249_v3 = vadd.s32 96, %v4206_v62  ;;  %v4252_v48 = vadd.s32 104, %v4206_v62  ;;  %v4255_v31 = vadd.s32 120, %v4206_v62  ;;  %v1610_v22 = vcvt.s32.f32 %v4206_v62 }
 0x171   : > { %v1582_v24 = vmin.f32 %v1578_v43, %v1570_v15  ;;  %v1611_v51 = vcvt.s32.f32 %v4221_v23  ;;  %v1613_v53 = vcvt.s32.f32 %v4224_v37  ;;  %v1614_v11 = vcvt.s32.f32 %v4227_v28 }
 0x172   : > { %v1615_v7 = vcvt.s32.f32 %v4232_v14  ;;  %v1617_v43 = vcvt.s32.f32 %v4235_v4  ;;  %v1618_v36 = vcvt.s32.f32 %v4238_v30  ;;  %v1619_v8 = vcvt.s32.f32 %v4241_v25 }
 0x173   : > { %v1585_v41 = vmin.f32 %v1582_v24, %v1583_v54  ;;  %v1621_v19 = vcvt.s32.f32 %v4244_v2  ;;  %v1623_v21 = vcvt.s32.f32 %v4252_v48  ;;  %v1625_v26 = vcvt.s32.f32 %v4255_v31 }
 0x175   : > { %v1586_v60 = vmin.f32 %v1584_v33, %v1585_v41 }
 0x177   : > { %v1587_v46 = vrot.slane %v1586_v60, 4 }
 0x179   : > { %v1588_v49 = vmin.f32 %v1586_v60, %v1587_v46 }
 0x17b   : > { %v1589_v58 = vrot.slane %v1588_v49, 2 }
 0x17d   : > { %v1590_v35 = vmin.f32 %v1588_v49, %v1589_v58 }
 0x17f   : > { %v1591_v42 = vrot.slane %v1590_v35, 1 }
 0x181   : > { %v1592_v27 = vmin.f32 %v1590_v35, %v1591_v42 }
 0x183   : > { %vm1628_vm3 = vcmp.eq.f32.partialorder %v4168_v61, %v1592_v27  ;;  %vm1632_vm4 = vcmp.eq.f32.partialorder %v4172_v59, %v1592_v27  ;;  %vm1636_vm5 = vcmp.eq.f32.partialorder %v4194_v63, %v1592_v27  ;;  %vm1640_vm6 = vcmp.eq.f32.partialorder %v1570_v15, %v1592_v27 }
 0x184   : > { %v1644_v18 = vsel %vm1628_vm3, %v1612_v56, 128.0  ;;  %v1648_v0 = vsel %vm1632_vm4, %v1616_v5, 128.0  ;;  %v1652_v17 = vsel %vm1636_vm5, %v1620_v32, 128.0  ;;  %v1656_v47 = vsel %vm1640_vm6, %v1624_v6, 128.0 }
 0x185   : > { %v1660_v52 = vmin.f32 %v1644_v18, %v1648_v0  ;;  %vm1626_vm7 = vcmp.eq.f32.partialorder %v4144_v40, %v1592_v27  ;;  %vm1627_vm8 = vcmp.eq.f32.partialorder %v4136_v16, %v1592_v27  ;;  %vm1629_vm9 = vcmp.eq.f32.partialorder %v4156_v55, %v1592_v27 }
 0x186   : > { %vm1630_vm10 = vcmp.eq.f32.partialorder %v4148_v34, %v1592_v27  ;;  %vm1631_vm11 = vcmp.eq.f32.partialorder %v4138_v38, %v1592_v27  ;;  %vm1633_vm12 = vcmp.eq.f32.partialorder %v4160_v44, %v1592_v27  ;;  %vm1634_vm13 = vcmp.eq.f32.partialorder %v4185_v1, %v1592_v27 }
 0x187   : > { %v1664_v61 = vmin.f32 %v1660_v52, %v1652_v17  ;;  %vm1635_vm14 = vcmp.eq.f32.partialorder %v4180_v12, %v1592_v27  ;;  %vm1637_vm15 = vcmp.eq.f32.partialorder %v4190_v45, %v1592_v27  ;;  %vm1638_vm1 = vcmp.eq.f32.partialorder %v4200_v29, %v1592_v27 }
 0x188   : > { %vm1639_vm3 = vcmp.eq.f32.partialorder %v4197_v13, %v1592_v27  ;;  %vm1641_vm4 = vcmp.eq.f32.partialorder %v4203_v57, %v1592_v27  ;;  %v1642_v16 = vsel %vm1626_vm7, %v1610_v22, 128.0  ;;  %v1643_v38 = vsel %vm1627_vm8, %v1611_v51, 128.0 }
 0x189   : > { %v1668_v40 = vmin.f32 %v1664_v61, %v1656_v47  ;;  %v1645_v34 = vsel %vm1629_vm9, %v1613_v53, 128.0  ;;  %v1646_v55 = vsel %vm1630_vm10, %v1614_v11, 128.0  ;;  %v1647_v44 = vsel %vm1631_vm11, %v1615_v7, 128.0 }
 0x18a   : > { %v1622_v59 = vcvt.s32.f32 %v4249_v3  ;;  %v1649_v63 = vsel %vm1633_vm12, %v1617_v43, 128.0  ;;  %v1658_v33 = vmin.f32 %v1642_v16, %v1646_v55  ;;  %v1650_v54 = vsel %vm1634_vm13, %v1618_v36, 128.0 }
 0x18b   : > { %v1659_v15 = vmin.f32 %v1643_v38, %v1647_v44  ;;  %v1661_v24 = vmin.f32 %v1645_v34, %v1649_v63  ;;  %v1651_v39 = vsel %vm1635_vm14, %v1619_v8, 128.0  ;;  %v1653_v41 = vsel %vm1637_vm15, %v1621_v19, 128.0 }
 0x18c   : > { %v1662_v60 = vmin.f32 %v1658_v33, %v1650_v54  ;;  %v1654_v46 = vsel %vm1638_vm1, %v1622_v59, 128.0  ;;  %v1655_v1 = vsel %vm1639_vm3, %v1623_v21, 128.0  ;;  %v1657_v35 = vsel %vm1641_vm4, %v1625_v26, 128.0 }
 0x18d   : > { %v1663_v49 = vmin.f32 %v1659_v15, %v1651_v39  ;;  %v1665_v58 = vmin.f32 %v1661_v24, %v1653_v41  ;;  %v5128_v16 = vmov 0.0   ;;  %v5133_v33 = vmov 0 }
 0x18e   : > { %v1666_v42 = vmin.f32 %v1662_v60, %v1654_v46  ;;  %v5137_v46 = vmov 0 }
 0x18f   : > { %v1667_v12 = vmin.f32 %v1663_v49, %v1655_v1  ;;  %v1669_v3 = vmin.f32 %v1665_v58, %v1657_v35 }
 0x191   : > { %v1670_v48 = vmin.f32 %v1666_v42, %v1667_v12  ;;  %v1671_v31 = vmin.f32 %v1668_v40, %v1669_v3  ;;  %v3538_v40 = vmov 1.0  }
 0x193   : > { %v1672_v18 = vmin.f32 %v1670_v48, %v1671_v31 }
 0x195   : > { %v1673_v45 = vrot.slane %v1672_v18, 4 }
 0x197   : > { %v1674_v0 = vmin.f32 %v1672_v18, %v1673_v45 }
 0x199   : > { %v1675_v17 = vrot.slane %v1674_v0, 2 }
 0x19b   : > { %v1676_v47 = vmin.f32 %v1674_v0, %v1675_v17 }
 0x19d   : > { %v1677_v29 = vrot.slane %v1676_v47, 1 }
 0x19f   : > { %v4322_v52 = vmin.f32 %v1676_v47, %v1677_v29  ;;  %v4510_v47 = vand.u32 4294901760, %v1727_v50 }
 0x1a1   : > { %vm4325_vm5 = vcmp.eq.f32.partialorder %v1625_v26, %v4322_v52  ;;  %vm4332_vm6 = vcmp.eq.f32.partialorder %v1624_v6, %v4322_v52  ;;  %vm4337_vm7 = vcmp.eq.f32.partialorder %v1623_v21, %v4322_v52  ;;  %vm4342_vm8 = vcmp.eq.f32.partialorder %v1622_v59, %v4322_v52 }
 0x1a2   : > { %v2664_v38 = vsel %vm4325_vm5, 1.0, %v5128_v16  ;;  %3113 = vmatpush3.msk.msra.mxu0 %vm4325_vm5, %v3538_v40  ;;  %v2663_v10 = vsel %vm4332_vm6, 1.0, %v5128_v16  ;;  %v2662_v6 = vsel %vm4337_vm7, 1.0, %v5128_v16  ;;  %v2661_v34 = vsel %vm4342_vm8, 1.0, %v5128_v16 }
 0x1a3   : > { %v4361_v55 = vsub.f32 %v2664_v38, %v2664_v38  ;;  %3114 = vmatprep.subr.mxu0 %v5128_v16  ;;  %v4364_v44 = vsub.f32 %v2663_v10, %v2663_v10  ;;  %v4366_v59 = vsub.f32 %v2662_v6, %v2662_v6  ;;  %v4368_v63 = vsub.f32 %v2661_v34, %v2661_v34 }
 0x1a4   : > { %3115 = vmatpush3.msk.msra.mxu0 %vm4332_vm6, %v3538_v40  ;;  %vm4376_vm9 = vcmp.eq.f32.partialorder %v1621_v19, %v4322_v52  ;;  %vm4383_vm10 = vcmp.eq.f32.partialorder %v1620_v32, %v4322_v52  ;;  %vm4390_vm11 = vcmp.eq.f32.partialorder %v1619_v8, %v4322_v52  ;;  %vm4397_vm12 = vcmp.eq.f32.partialorder %v1618_v36, %v4322_v52 }
 0x1a5   : > { %v5134_v33 = vsel %vm4390_vm11, 4294967295, %v5133_v33  ;;  %3116 = vmatprep.subr.mxu0 %v5128_v16  ;;  %v2660_v9 = vsel %vm4376_vm9, 1.0, %v5128_v16  ;;  %v1822_v32 = vand.u32 4294901760, %v4361_v55  ;;  %v2659_v25 = vsel %vm4383_vm10, 1.0, %v5128_v16 }
 0x1a6   : > { %v1829_v8 = vand.u32 4294901760, %v4364_v44  ;;  %3117 = vmatpush3.msk.msra.mxu0 %vm4337_vm7, %v3538_v40  ;;  %v4413_v30 = vsub.f32 %v2660_v9, %v2660_v9  ;;  %v2658_v36 = vsel %vm4390_vm11, 1.0, %v5128_v16  ;;  %v1836_v19 = vand.u32 4294901760, %v4366_v59 }
 0x1a7   : > { %3118 = vmatprep.subr.mxu0 %v5128_v16  ;;  %v1823_v54 = vsub.f32 %v4361_v55, %v1822_v32  ;;  %v4423_v15 = vsub.f32 %v2659_v25, %v2659_v25  ;;  %v2657_v39 = vsel %vm4397_vm12, 1.0, %v5128_v16  ;;  %v4434_v41 = vsub.f32 %v2658_v36, %v2658_v36 }
 0x1a8   : > { %v1830_v24 = vsub.f32 %v4364_v44, %v1829_v8  ;;  %3119 = vmatpush3.msk.msra.mxu0 %vm4342_vm8, %v3538_v40  ;;  %v1843_v60 = vand.u32 4294901760, %v4368_v63  ;;  %vm4440_vm13 = vcmp.eq.f32.partialorder %v1617_v43, %v4322_v52  ;;  %v1837_v58 = vsub.f32 %v4366_v59, %v1836_v19 }
 0x1a9   : > { %v5138_v46 = vsel %vm4440_vm13, 4294967295, %v5137_v46  ;;  %3120 = vmatprep.subr.mxu0 %v5128_v16  ;;  %v1824_v49 = vand.u32 4294901760, %v1823_v54  ;;  %v1850_v1 = vand.u32 4294901760, %v4413_v30  ;;  %v4452_v35 = vsub.f32 %v2657_v39, %v2657_v39 }
 0x1aa   : > { %3121 = vmatpush3.msk.msra.mxu0 %vm4376_vm9, %v3538_v40  ;;  %v2656_v4 = vsel %vm4440_vm13, 1.0, %v5128_v16  ;;  %vm4460_vm14 = vcmp.eq.f32.partialorder %v1616_v5, %v4322_v52  ;;  %v1831_v42 = vand.u32 4294901760, %v1830_v24  ;;  %v1844_v12 = vsub.f32 %v4368_v63, %v1843_v60 }
 0x1ab   : > { %3122 = vmatprep.subr.mxu0 %v5128_v16  ;;  %3148 = vmatpush3.msra.mxu1 %v1824_v49  ;;  %v1857_v3 = vand.u32 4294901760, %v4423_v15  ;;  %vm4472_vm15 = vcmp.eq.f32.partialorder %v1615_v7, %v4322_v52  ;;  %v2655_v5 = vsel %vm4460_vm14, 1.0, %v5128_v16  ;;  %v1864_v14 = vand.u32 4294901760, %v4434_v41 }
 0x1ac   : > { %3123 = vmatpush3.msk.msra.mxu0 %vm4383_vm10, %v3538_v40  ;;  %3149 = vmatprep.subr.mxu1 %v5128_v16  ;;  %v1838_v7 = vand.u32 4294901760, %v1837_v58  ;;  %v4488_v31 = vsub.f32 %v2656_v4, %v2656_v4  ;;  %v1851_v18 = vsub.f32 %v4413_v30, %v1850_v1  ;;  %vm4496_vm1 = vcmp.eq.f32.partialorder %v1614_v11, %v4322_v52 }
 0x1ad   : > { %3124 = vmatprep.subr.mxu0 %v5128_v16  ;;  %3150 = vmatpush3.msra.mxu1 %v1831_v42  ;;  %v1858_v0 = vsub.f32 %v4423_v15, %v1857_v3  ;;  %v2654_v17 = vsel %vm4472_vm15, 1.0, %v5128_v16  ;;  %v1845_v28 = vand.u32 4294901760, %v1844_v12  ;;  %v4513_v11 = vsub.f32 %v2655_v5, %v2655_v5 }
 0x1ae   : > { %3125 = vmatpush3.msk.msra.mxu0 %vm4390_vm11, %v3538_v40  ;;  %3151 = vmatprep.subr.mxu1 %v5128_v16  ;;  %v1871_v29 = vand.u32 4294901760, %v4452_v35  ;;  %vm4519_vm3 = vcmp.eq.f32.partialorder %v1613_v53, %v4322_v52  ;;  %v1865_v10 = vsub.f32 %v4434_v41, %v1864_v14  ;;  %v2653_v6 = vsel %vm4496_vm1, 1.0, %v5128_v16 }
 0x1af   : > { %3126 = vmatprep.subr.mxu0 %v5128_v16  ;;  %3152 = vmatpush3.msra.mxu1 %v1838_v7  ;;  %v1852_v37 = vand.u32 4294901760, %v1851_v18  ;;  %v4534_v53 = vsub.f32 %v2654_v17, %v2654_v17  ;;  %v1878_v34 = vand.u32 4294901760, %v4488_v31  ;;  %vm4540_vm4 = vcmp.eq.f32.partialorder %v1612_v56, %v4322_v52 }
 0x1b0   : > { %3127 = vmatpush3.msk.msra.mxu0 %vm4397_vm12, %v3538_v40  ;;  %3153 = vmatprep.subr.mxu1 %v5128_v16  ;;  %v1859_v25 = vand.u32 4294901760, %v1858_v0  ;;  %v2652_v36 = vsel %vm4519_vm3, 1.0, %v5128_v16  ;;  %v4552_v54 = vsub.f32 %v1727_v50, %v4510_v47  ;;  %v4555_v20 = vsub.f32 %v2653_v6, %v2653_v6 }
 0x1b1   : > { %3128 = vmatprep.subr.mxu0 %v5128_v16  ;;  %3154 = vmatpush3.msra.mxu1 %v1845_v28  ;;  %v1872_v56 = vsub.f32 %v4452_v35, %v1871_v29  ;;  %v1885_v24 = vand.u32 4294901760, %v4513_v11  ;;  %vm4564_vm0 = vcmp.eq.f32.partialorder %v1611_v51, %v4322_v52  ;;  %v1866_v49 = vand.u32 4294901760, %v1865_v10 }
 0x1b2   : > { %3129 = vmatpush3.msk.msra.mxu0 %vm4440_vm13, %v3538_v40  ;;  %3155 = vmatprep.subr.mxu1 %v5128_v16  ;;  %v2651_v58 = vsel %vm4540_vm4, 1.0, %v5128_v16  ;;  %v4579_v23 = vsub.f32 %v2652_v36, %v2652_v36  ;;  %v1879_v51 = vsub.f32 %v4488_v31, %v1878_v34  ;;  %v1892_v4 = vand.u32 4294901760, %v4534_v53 }
 0x1b3   : > { %3130 = vmatprep.subr.mxu0 %v5128_v16  ;;  %3156 = vmatpush3.msra.mxu1 %v1852_v37  ;;  %vm4588_vm2 = vcmp.eq.f32.partialorder %v1610_v22, %v4322_v52  ;;  %v2650_v12 = vsel %vm4564_vm0, 1.0, %v5128_v16  ;;  %v1811_v50 = vand.u32 4294901760, %v4552_v54  ;;  %v3357_v5 = vtrunc.f32 %v4322_v52 }
 0x1b4   : > { %3131 = vmatpush3.msk.msra.mxu0 %vm4460_vm14, %v3538_v40  ;;  %3157 = vmatprep.subr.mxu1 %v5128_v16  ;;  %v1873_v62 = vand.u32 4294901760, %v1872_v56  ;;  %v4602_v22 = vsub.f32 %v2651_v58, %v2651_v58  ;;  %v1886_v7 = vsub.f32 %v4513_v11, %v1885_v24  ;;  %v1899_v18 = vand.u32 4294901760, %v4555_v20 }
 0x1b5   : > { %3132 = vmatprep.subr.mxu0 %v5128_v16  ;;  %3158 = vmatpush3.msra.mxu1 %v1859_v25  ;;  %v2649_v52 = vsel %vm4588_vm2, 1.0, %v5128_v16  ;;  %v3358_v0 = vcvt.f32.s32 %v3357_v5  ;;  %v1880_v17 = vand.u32 4294901760, %v1879_v51  ;;  %v4616_v28 = vsub.f32 %v2650_v12, %v2650_v12 }
 0x1b6   : > { %3133 = vmatpush3.msk.msra.mxu0 %vm4472_vm15, %v3538_v40  ;;  %3159 = vmatprep.subr.mxu1 %v5128_v16  ;;  %v1893_v10 = vsub.f32 %v4534_v53, %v1892_v4  ;;  %v1906_v6 = vand.u32 4294901760, %v4579_v23  ;;  %v1812_v37 = vsub.f32 %v4552_v54, %v1811_v50  ;;  %v1887_v25 = vand.u32 4294901760, %v1886_v7 }
 0x1b7   : > { %3134 = vmatprep.subr.mxu0 %v5128_v16  ;;  %3160 = vmatpush3.msra.mxu1 %v1866_v49  ;;  %2371 = vst [vmem:[%s279_s16] sm:$0x1] %v3358_v0  ;;  %v4633_v36 = vsub.f32 %v2649_v52, %v2649_v52  ;;  %v1900_v56 = vsub.f32 %v4555_v20, %v1899_v18  ;;  %v1913_v49 = vand.u32 4294901760, %v4602_v22  ;;  %v1920_v12 = vand.u32 4294901760, %v4616_v28 }
 0x1b8   : > { %3135 = vmatpush3.msk.msra.mxu0 %vm4496_vm1, %v3538_v40  ;;  %3161 = vmatprep.subr.mxu1 %v5128_v16  ;;  %v1894_v58 = vand.u32 4294901760, %v1893_v10  ;;  %v1907_v51 = vsub.f32 %v4579_v23, %v1906_v6  ;;  %v1813_v5 = vand.u32 4294901760, %v1812_v37 }
 0x1b9   : > { %3136 = vmatprep.subr.mxu0 %v5128_v16  ;;  %3162 = vmatpush3.msra.mxu1 %v1873_v62  ;;  %v1901_v62 = vand.u32 4294901760, %v1900_v56  ;;  %v1914_v7 = vsub.f32 %v4602_v22, %v1913_v49  ;;  %v1927_v52 = vand.u32 4294901760, %v4633_v36 }
 0x1ba   : > { %3137 = vmatpush3.msk.msra.mxu0 %vm4519_vm3, %v3538_v40  ;;  %3163 = vmatprep.subr.mxu1 %v5128_v16  ;;  %v1908_v0 = vand.u32 4294901760, %v1907_v51 }
 0x1bb   : > { %3138 = vmatprep.subr.mxu0 %v5128_v16  ;;  %3164 = vmatpush3.msra.mxu1 %v1880_v17  ;;  %v1921_v17 = vsub.f32 %v4616_v28, %v1920_v12  ;;  %v1915_v10 = vand.u32 4294901760, %v1914_v7  ;;  %v1928_v37 = vsub.f32 %v4633_v36, %v1927_v52 }
 0x1bc   : > { %3139 = vmatpush3.msk.msra.mxu0 %vm4540_vm4, %v3538_v40  ;;  %3165 = vmatprep.subr.mxu1 %v5128_v16 }
 0x1bd   : > { %3140 = vmatprep.subr.mxu0 %v5128_v16  ;;  %3166 = vmatpush3.msra.mxu1 %v1887_v25  ;;  %v1922_v25 = vand.u32 4294901760, %v1921_v17  ;;  %v1929_v56 = vand.u32 4294901760, %v1928_v37 }
 0x1be   : > { %3141 = vmatpush3.msk.msra.mxu0 %vm4564_vm0, %v3538_v40  ;;  %3167 = vmatprep.subr.mxu1 %v5128_v16 }
 0x1bf   : > { %3142 = vmatprep.subr.mxu0 %v5128_v16  ;;  %3168 = vmatpush3.msra.mxu1 %v1894_v58 }
 0x1c0   : > { %3143 = vmatpush3.msk.msra.mxu0 %vm4588_vm2, %v3538_v40  ;;  %3169 = vmatprep.subr.mxu1 %v5128_v16 }
 0x1c1   : > { %3170 = vmatpush3.msra.mxu1 %v1901_v62  ;;  %3182 = vmatprep.subr.mxu0 %v5128_v16 }
 0x1c2   : > { %3145 = vmatmul.mubr.f32.vlgmr.msra.gmra.mxu0 %v1813_v5  ;;  %3171 = vmatprep.subr.mxu1 %v5128_v16 }
 0x1c3   : > { %3183 = vmatpush3.msra.mxu0 %v4361_v55  ;;  %3172 = vmatpush3.msra.mxu1 %v1908_v0 }
 0x1c4   : > { %3184 = vmatprep.subr.mxu0 %v5128_v16  ;;  %3173 = vmatprep.subr.mxu1 %v5128_v16 }
 0x1c5   : > { %3185 = vmatpush3.msra.mxu0 %v4364_v44  ;;  %3174 = vmatpush3.msra.mxu1 %v1915_v10 }
 0x1c6   : > { %3186 = vmatprep.subr.mxu0 %v5128_v16  ;;  %3175 = vmatprep.subr.mxu1 %v5128_v16 }
 0x1c7   : > { %3187 = vmatpush3.msra.mxu0 %v4366_v59  ;;  %3176 = vmatpush3.msra.mxu1 %v1922_v25 }
 0x1c8   : > { %3188 = vmatprep.subr.mxu0 %v5128_v16  ;;  %3177 = vmatprep.subr.mxu1 %v5128_v16 }
 0x1c9   : > { %3189 = vmatpush3.msra.mxu0 %v4368_v63  ;;  %3178 = vmatpush3.msra.mxu1 %v1929_v56 }
 0x1ca   : > { %3190 = vmatprep.subr.mxu0 %v5128_v16  ;;  %3217 = vmatprep.subr.mxu1 %v5128_v16 }
 0x1cb   : > { %3191 = vmatpush3.msra.mxu0 %v4413_v30  ;;  %3180 = vmatmul.mubr.f32.vlgmr.msra.gmra.mxu1 %v4510_v47 }
 0x1cc   : > { %3192 = vmatprep.subr.mxu0 %v5128_v16  ;;  %3218 = vmatpush3.msk.msra.mxu1 %vm4325_vm5, %v3538_v40 }
 0x1cd   : > { %3193 = vmatpush3.msra.mxu0 %v4423_v15  ;;  %3219 = vmatprep.subr.mxu1 %v5128_v16 }
 0x1ce   : > { %3194 = vmatprep.subr.mxu0 %v5128_v16  ;;  %3220 = vmatpush3.msk.msra.mxu1 %vm4332_vm6, %v3538_v40 }
 0x1cf   : > { %3195 = vmatpush3.msra.mxu0 %v4434_v41  ;;  %3221 = vmatprep.subr.mxu1 %v5128_v16 }
 0x1d0   : > { %3196 = vmatprep.subr.mxu0 %v5128_v16  ;;  %3222 = vmatpush3.msk.msra.mxu1 %vm4337_vm7, %v3538_v40 }
 0x1d1   : > { %3197 = vmatpush3.msra.mxu0 %v4452_v35  ;;  %3223 = vmatprep.subr.mxu1 %v5128_v16 }
 0x1d2   : > { %3198 = vmatprep.subr.mxu0 %v5128_v16  ;;  %3224 = vmatpush3.msk.msra.mxu1 %vm4342_vm8, %v3538_v40 }
 0x1d3   : > { %3199 = vmatpush3.msra.mxu0 %v4488_v31  ;;  %3225 = vmatprep.subr.mxu1 %v5128_v16 }
 0x1d4   : > { %3200 = vmatprep.subr.mxu0 %v5128_v16  ;;  %3226 = vmatpush3.msk.msra.mxu1 %vm4376_vm9, %v3538_v40 }
 0x1d5   : > { %3201 = vmatpush3.msra.mxu0 %v4513_v11  ;;  %3227 = vmatprep.subr.mxu1 %v5128_v16 }
 0x1d6   : > { %3202 = vmatprep.subr.mxu0 %v5128_v16  ;;  %3228 = vmatpush3.msk.msra.mxu1 %vm4383_vm10, %v3538_v40 }
 0x1d7   : > { %3203 = vmatpush3.msra.mxu0 %v4534_v53  ;;  %3229 = vmatprep.subr.mxu1 %v5128_v16 }
 0x1d8   : > { %3204 = vmatprep.subr.mxu0 %v5128_v16  ;;  %3230 = vmatpush3.msk.msra.mxu1 %vm4390_vm11, %v3538_v40 }
 0x1d9   : > { %3205 = vmatpush3.msra.mxu0 %v4555_v20  ;;  %3231 = vmatprep.subr.mxu1 %v5128_v16 }
 0x1da   : > { %3206 = vmatprep.subr.mxu0 %v5128_v16  ;;  %3232 = vmatpush3.msk.msra.mxu1 %vm4397_vm12, %v3538_v40 }
 0x1db   : > { %3207 = vmatpush3.msra.mxu0 %v4579_v23  ;;  %3233 = vmatprep.subr.mxu1 %v5128_v16 }
 0x1dc   : > { %3208 = vmatprep.subr.mxu0 %v5128_v16  ;;  %3234 = vmatpush3.msk.msra.mxu1 %vm4440_vm13, %v3538_v40  ;;  %vm5154_vm13 = vmmov 0  }
 0x1dd   : > { %3209 = vmatpush3.msra.mxu0 %v4602_v22  ;;  %3235 = vmatprep.subr.mxu1 %v5128_v16 }
 0x1de   : > { %3210 = vmatprep.subr.mxu0 %v5128_v16  ;;  %3236 = vmatpush3.msk.msra.mxu1 %vm4460_vm14, %v3538_v40 }
 0x1df   : > { %3211 = vmatpush3.msra.mxu0 %v4616_v28  ;;  %3237 = vmatprep.subr.mxu1 %v5128_v16 }
 0x1e0   : > { %3212 = vmatprep.subr.mxu0 %v5128_v16  ;;  %3238 = vmatpush3.msk.msra.mxu1 %vm4472_vm15, %v3538_v40 }
 0x1e1   : > { %3213 = vmatpush3.msra.mxu0 %v4633_v36  ;;  %3214 = vmatprep.mubr.msk.f32.mxu0 %vm5154_vm13, %v5128_v16 }
 0x1e2   : > { %3239 = vmatprep.subr.mxu1 %v5128_v16  ;;  %3215 = vmatmul.mubr.f32.vlgmr.msra.gmra.mxu0 %v4552_v54 }
 0x1e3   : > { %3240 = vmatpush3.msk.msra.mxu1 %vm4496_vm1, %v3538_v40  ;;  %3252 = vmatprep.subr.mxu0 %v5128_v16 }
 0x1e4   : > { %3241 = vmatprep.subr.mxu1 %v5128_v16  ;;  %3253 = vmatpush3.msra.mxu0 %v1822_v32 }
 0x1e5   : > { %3242 = vmatpush3.msk.msra.mxu1 %vm4519_vm3, %v3538_v40  ;;  %3254 = vmatprep.subr.mxu0 %v5128_v16 }
 0x1e6   : > { %3243 = vmatprep.subr.mxu1 %v5128_v16  ;;  %3255 = vmatpush3.msra.mxu0 %v1829_v8 }
 0x1e7   : > { %3244 = vmatpush3.msk.msra.mxu1 %vm4540_vm4, %v3538_v40  ;;  %3256 = vmatprep.subr.mxu0 %v5128_v16 }
 0x1e8   : > { %3245 = vmatprep.subr.mxu1 %v5128_v16  ;;  %3257 = vmatpush3.msra.mxu0 %v1836_v19  ;;  %v3416_v19 = vld [vmem:[%s3690_s20] sm:$0xf]  ;;  %s2496_s20 = sshll.u32 %s279_s16, 4  ;;  %s2497_s20 = int_to_ptr.vmem [resolvable:$true] %s2496_s20 }
 0x1e9   : > { %3246 = vmatpush3.msk.msra.mxu1 %vm4564_vm0, %v3538_v40  ;;  %3258 = vmatprep.subr.mxu0 %v5128_v16  ;;  %p3424_p0 = scmp.lt.s32.totalorder %s2497_s20, %s3422_s3 }
 0x1ea   : > { %3247 = vmatprep.subr.mxu1 %v5128_v16  ;;  %3259 = vmatpush3.msra.mxu0 %v1843_v60 }
 0x1eb   : > { %3248 = vmatpush3.msk.msra.mxu1 %vm4588_vm2, %v3538_v40  ;;  %3249 = vmatprep.mubr.msk.f32.mxu1 %vm5154_vm13, %v5128_v16 }
 0x1ec   : > { %3260 = vmatprep.subr.mxu0 %v5128_v16  ;;  %3250 = vmatmul.mubr.f32.vlgmr.msra.gmra.mxu1 %v1811_v50 }
 0x1ed   : > { %3261 = vmatpush3.msra.mxu0 %v1850_v1  ;;  %3287 = vmatprep.subr.mxu1 %v5128_v16 }
 0x1ee   : > { %3262 = vmatprep.subr.mxu0 %v5128_v16  ;;  %3288 = vmatpush3.msk.msra.mxu1 %vm4325_vm5, %v3538_v40 }
 0x1ef   : > { %3263 = vmatpush3.msra.mxu0 %v1857_v3  ;;  %3289 = vmatprep.subr.mxu1 %v5128_v16 }
 0x1f0   : > { %3264 = vmatprep.subr.mxu0 %v5128_v16  ;;  %3290 = vmatpush3.msk.msra.mxu1 %vm4332_vm6, %v3538_v40 }
 0x1f1   : > { %3265 = vmatpush3.msra.mxu0 %v1864_v14  ;;  %3291 = vmatprep.subr.mxu1 %v5128_v16 }
 0x1f2   : > { %3266 = vmatprep.subr.mxu0 %v5128_v16  ;;  %3292 = vmatpush3.msk.msra.mxu1 %vm4337_vm7, %v3538_v40 }
 0x1f3   : > { %3267 = vmatpush3.msra.mxu0 %v1871_v29  ;;  %3293 = vmatprep.subr.mxu1 %v5128_v16 }
 0x1f4   : > { %3268 = vmatprep.subr.mxu0 %v5128_v16  ;;  %3294 = vmatpush3.msk.msra.mxu1 %vm4342_vm8, %v3538_v40 }
 0x1f5   : > { %3269 = vmatpush3.msra.mxu0 %v1878_v34  ;;  %3295 = vmatprep.subr.mxu1 %v5128_v16 }
 0x1f6   : > { %3270 = vmatprep.subr.mxu0 %v5128_v16  ;;  %3296 = vmatpush3.msk.msra.mxu1 %vm4376_vm9, %v3538_v40 }
 0x1f7   : > { %3271 = vmatpush3.msra.mxu0 %v1885_v24  ;;  %3297 = vmatprep.subr.mxu1 %v5128_v16 }
 0x1f8   : > { %3272 = vmatprep.subr.mxu0 %v5128_v16  ;;  %3298 = vmatpush3.msk.msra.mxu1 %vm4383_vm10, %v3538_v40 }
 0x1f9   : > { %3273 = vmatpush3.msra.mxu0 %v1892_v4  ;;  %3299 = vmatprep.subr.mxu1 %v5128_v16 }
 0x1fa   : > { %3274 = vmatprep.subr.mxu0 %v5128_v16  ;;  %3300 = vmatpush3.msk.msra.mxu1 %vm4390_vm11, %v3538_v40  ;;  %vm5155_vm11 = vnez %v5138_v46 }
 0x1fb   : > { %3275 = vmatpush3.msra.mxu0 %v1899_v18  ;;  %3301 = vmatprep.subr.mxu1 %v5128_v16 }
 0x1fc   : > { %3276 = vmatprep.subr.mxu0 %v5128_v16  ;;  %3302 = vmatpush3.msk.msra.mxu1 %vm4397_vm12, %v3538_v40 }
 0x1fd   : > { %3277 = vmatpush3.msra.mxu0 %v1906_v6  ;;  %3303 = vmatprep.subr.mxu1 %v5128_v16 }
 0x1fe   : > { %3278 = vmatprep.subr.mxu0 %v5128_v16  ;;  %3304 = vmatpush3.msk.msra.mxu1 %vm5155_vm11, %v3538_v40 }
 0x1ff   : > { %3279 = vmatpush3.msra.mxu0 %v1913_v49  ;;  %3305 = vmatprep.subr.mxu1 %v5128_v16 }
 0x200   : > { %3280 = vmatprep.subr.mxu0 %v5128_v16  ;;  %3306 = vmatpush3.msk.msra.mxu1 %vm4460_vm14, %v3538_v40 }
 0x201   : > { %3281 = vmatpush3.msra.mxu0 %v1920_v12  ;;  %3307 = vmatprep.subr.mxu1 %v5128_v16 }
 0x202   : > { %3282 = vmatprep.subr.mxu0 %v5128_v16  ;;  %3308 = vmatpush3.msk.msra.mxu1 %vm4472_vm15, %v3538_v40 }
 0x203   : > { %3283 = vmatpush3.msra.mxu0 %v1927_v52  ;;  %3284 = vmatprep.mubr.msk.f32.mxu0 %vm5154_vm13, %v5128_v16 }
 0x204   : > { %3309 = vmatprep.subr.mxu1 %v5128_v16  ;;  %3285 = vmatmul.mubr.f32.vlgmr.msra.gmra.mxu0 %v4510_v47 }
 0x205   : > { %3310 = vmatpush3.msk.msra.mxu1 %vm4496_vm1, %v3538_v40  ;;  %3322 = vmatprep.subr.mxu0 %v5128_v16 }
 0x206   : > { %3311 = vmatprep.subr.mxu1 %v5128_v16  ;;  %3323 = vmatpush3.xpose.msk.msra.mxu0 %vm4325_vm5, %v3538_v40  ;;  %vm5156_vm5 = vnez %v5134_v33 }
 0x207   : > { %3312 = vmatpush3.msk.msra.mxu1 %vm4519_vm3, %v3538_v40  ;;  %3324 = vmatprep.subr.mxu0 %v5128_v16 }
 0x208   : > { %3313 = vmatprep.subr.mxu1 %v5128_v16  ;;  %3319 = vmatprep.mubr.msk.f32.mxu1 %vm5154_vm13, %v5128_v16 }
 0x209   : > { %3314 = vmatpush3.msk.msra.mxu1 %vm4540_vm4, %v3538_v40  ;;  %3354 = vmatprep.mubr.msk.f32.mxu0 %vm5154_vm13, %v5128_v16 }
 0x20a   : > { %3315 = vmatprep.subr.mxu1 %v5128_v16  ;;  %3325 = vmatpush3.xpose.msk.msra.mxu0 %vm4332_vm6, %v3538_v40 }
 0x20b   : > { %3316 = vmatpush3.msk.msra.mxu1 %vm4564_vm0, %v3538_v40  ;;  %3326 = vmatprep.subr.mxu0 %v5128_v16 }
 0x20c   : > { %3317 = vmatprep.subr.mxu1 %v5128_v16 }
 0x20d   : > { %3318 = vmatpush3.msk.msra.mxu1 %vm4588_vm2, %v3538_v40 }
 0x20e   : > { %3320 = vmatmul.mubr.f32.vlgmr.msra.gmra.mxu1 %v4510_v47  ;;  %3327 = vmatpush3.xpose.msk.msra.mxu0 %vm4337_vm7, %v3538_v40 }
 0x20f   : > { %3328 = vmatprep.subr.mxu0 %v5128_v16 }
 0x212   : > { %3329 = vmatpush3.xpose.msk.msra.mxu0 %vm4342_vm8, %v3538_v40 }
 0x213   : > { %3330 = vmatprep.subr.mxu0 %v5128_v16 }
 0x216   : > { %3331 = vmatpush3.xpose.msk.msra.mxu0 %vm4376_vm9, %v3538_v40 }
 0x217   : > { %3332 = vmatprep.subr.mxu0 %v5128_v16 }
 0x21a   : > { %3333 = vmatpush3.xpose.msk.msra.mxu0 %vm4383_vm10, %v3538_v40 }
 0x21b   : > { %3334 = vmatprep.subr.mxu0 %v5128_v16 }
 0x21e   : > { %3335 = vmatpush3.xpose.msk.msra.mxu0 %vm5156_vm5, %v3538_v40 }
 0x21f   : > { %3336 = vmatprep.subr.mxu0 %v5128_v16 }
 0x222   : > { %3337 = vmatpush3.xpose.msk.msra.mxu0 %vm4397_vm12, %v3538_v40 }
 0x223   : > { %3338 = vmatprep.subr.mxu0 %v5128_v16 }
 0x226   : > { %3339 = vmatpush3.xpose.msk.msra.mxu0 %vm5155_vm11, %v3538_v40 }
 0x227   : > { %3340 = vmatprep.subr.mxu0 %v5128_v16 }
 0x22a   : > { %3341 = vmatpush3.xpose.msk.msra.mxu0 %vm4460_vm14, %v3538_v40 }
 0x22b   : > { %3342 = vmatprep.subr.mxu0 %v5128_v16 }
 0x22e   : > { %3343 = vmatpush3.xpose.msk.msra.mxu0 %vm4472_vm15, %v3538_v40 }
 0x22f   : > { %3344 = vmatprep.subr.mxu0 %v5128_v16 }
 0x232   : > { %3345 = vmatpush3.xpose.msk.msra.mxu0 %vm4496_vm1, %v3538_v40 }
 0x233   : > { %3346 = vmatprep.subr.mxu0 %v5128_v16 }
 0x236   : > { %3347 = vmatpush3.xpose.msk.msra.mxu0 %vm4519_vm3, %v3538_v40 }
 0x237   : > { %3348 = vmatprep.subr.mxu0 %v5128_v16 }
 0x23a   : > { %3349 = vmatpush3.xpose.msk.msra.mxu0 %vm4540_vm4, %v3538_v40 }
 0x23b   : > { %3350 = vmatprep.subr.mxu0 %v5128_v16 }
 0x23e   : > { %3351 = vmatpush3.xpose.msk.msra.mxu0 %vm4564_vm0, %v3538_v40  ;;  %vm5157_vm0 = vcmask 1043456  }
 0x23f   : > { %3352 = vmatprep.subr.mxu0 %v5128_v16 }
 0x242   : > { %3353 = vmatpush3.xpose.msk.msra.mxu0 %vm4588_vm2, %v3538_v40 }
 0x245   : > { %3355 = vmatmul.mubr.f32.vlgmr.msra.gmra.mxu0 %v3538_v40 }
 0x282   : > { %v1815_v13 = vpop.f32.mrf.mxu0 }
 0x284   : > { %v3146_v57 = vpop.f32.mrf.mxu0 }
 0x28b   : > { %v1966_v27 = vpop.f32.mrf.mxu1 }
 0x28c   : > { %v1967_v33 = vadd.f32 %v1966_v27, %v1815_v13 }
 0x28d   : > { %v3181_v61 = vpop.f32.mrf.mxu1 }
 0x2a2   : > { %v2070_v55 = vpop.f32.mrf.mxu0 }
 0x2a3   : > { %v2071_v16 = vadd.f32 %v2070_v55, %v1967_v33 }
 0x2a4   : > { %v3216_v44 = vpop.f32.mrf.mxu0 }
 0x2ac   : > { %v2159_v59 = vpop.f32.mrf.mxu1 }
 0x2ad   : > { %v2160_v2 = vadd.f32 %v2159_v59, %v2071_v16 }
 0x2ae   : > { %v3251_v63 = vpop.f32.mrf.mxu1 }
 0x2c4   : > { %v2278_v21 = vpop.f32.mrf.mxu0 }
 0x2c5   : > { %v2279_v32 = vadd.f32 %v2278_v21, %v2160_v2 }
 0x2c6   : > { %v3286_v26 = vpop.f32.mrf.mxu0 }
 0x2ce   : > { %v2365_v8 = vpop.f32.mrf.mxu1 }
 0x2cf   : > { %v2366_v40 = vadd.f32 %v2365_v8, %v2279_v32 }
 0x2d0   : > { %v3321_v30 = vpop.f32.mrf.mxu1 }
 0x2d1   : > { %2369 = vst [vmem:[%s4961_s18] sm:$0xf] %v2366_v40  ;;  %v2372_v15 = vsub.f32 %v2366_v40, %v3416_v19 }
 0x2d3   : > { %v2373_v41 = vmul.f32 %v2372_v15, %v2372_v15 }
 0x2d5   : > { %v2374_v60 = vsel %vm5157_vm0, %v2373_v41, 0.0 }
 0x2d6   : > { %2375 = vadd.xlane.f32.xlu0 %v2374_v60 }
 0x305   : > { %v2453_v46 = vpop.f32.mrf.mxu0 }
 0x306   : > { %2457 = vst [vmem:[%s290_s21] sm:$0x1] %v2453_v46  ;;  %s3417_s21 = scalar_lea.vmem %s2497_s20, 16 }
 0x307   : > { %v3356_v1 = vpop.f32.mrf.mxu0  ;;  %p3418_p11 = scmp.ne.s32.totalorder %s2497_s20, %s3417_s21  ;;  %p3425_p1 = scmp.lt.s32.totalorder %s3423_s8, %s3417_s21 }
 0x309   : > { %p3419_p12 = pnand %p3418_p11, %p3622_p5  ;;  %p3426_p2 = por %p3425_p1, %p3424_p0 }
 0x30b   : > { %p3420_p13 = pneg %p3419_p12 }
 0x30d   : > { %p3427_p3 = pnand %p3426_p2, %p3420_p13 }
 0x30f   : > { %3430 = shalt.err (!%p3427_p3)
}
 0x310   : > { %s3431_s29 = scalar_lea.hbm %s4974_s14, 16  ;;  %s3435_s2 = scalar_lea.hbm %s5069_s5, 64 }
 0x311   : > { %p3432_p4 = scmp.ne.s32.totalorder %s4974_s14, %s3431_s29  ;;  %p3436_p9 = scmp.lt.s32.totalorder %s4974_s14, %s5069_s5 }
 0x312   : > { %p3437_p10 = scmp.lt.s32.totalorder %s3435_s2, %s3431_s29 }
 0x313   : > { %p3433_p7 = pnand %p3432_p4, %p3622_p5 }
 0x314   : > { %p3438_p11 = por %p3437_p10, %p3436_p9 }
 0x315   : > { %p3434_p8 = pneg %p3433_p7 }
 0x317   : > { %p3439_p12 = pnand %p3438_p11, %p3434_p8 }
 0x319   : > { %3442 = shalt.err (!%p3439_p12)
}
 0x31a   : > { %3362 = dma.vmem_to_hbm [thread:$0]  (%p3622_p5), %s2497_s20, 16, %s4974_s14, %s4983_s1  }
 0x31b   : > { %s2730_s3 = sshll.u32 %s3603_s28, 6  ;;  %s2483_s16 = sshll.u32 %s4961_s18, 4  ;;  %s2484_s16 = int_to_ptr.vmem [resolvable:$true] %s2483_s16 }
 0x31c   : > { %s2481_s8 = scalar_lea.hbm %s5068_s4, %s2730_s3  ;;  %s2459_s29 = scalar_lea.sflag [#allocation3], %s4576_s15 }
 0x31d   : > { %s3443_s19 = scalar_lea.vmem %s2484_s16, 64  ;;  %s3540_s2 = smov [#allocation2]  }
 0x31e   : > { %p3444_p13 = scmp.ne.s32.totalorder %s2484_s16, %s3443_s19  ;;  %s3447_s23 = sshll.u32 %s3540_s2, 4  ;;  %s3448_s23 = int_to_ptr.vmem [resolvable:$false] %s3447_s23 }
 0x31f   : > { %s3449_s13 = scalar_lea.vmem %s3448_s23, 128  ;;  %p3450_p2 = scmp.lt.s32.totalorder %s2484_s16, %s3448_s23 }
 0x320   : > { %p3445_p0 = pnand %p3444_p13, %p3622_p5  ;;  %p3451_p3 = scmp.lt.s32.totalorder %s3449_s13, %s3443_s19 }
 0x322   : > { %p3446_p1 = pneg %p3445_p0  ;;  %p3452_p4 = por %p3451_p3, %p3450_p2 }
 0x324   : > { %p3453_p7 = pnand %p3452_p4, %p3446_p1 }
 0x326   : > { %3456 = shalt.err (!%p3453_p7)
}
 0x327   : > { %s3457_s28 = scalar_lea.hbm %s2481_s8, 64  ;;  %s3461_s14 = scalar_lea.hbm %s5068_s4, 256 }
 0x328   : > { %p3458_p8 = scmp.ne.s32.totalorder %s2481_s8, %s3457_s28  ;;  %p3462_p11 = scmp.lt.s32.totalorder %s2481_s8, %s5068_s4 }
 0x329   : > { %p3463_p12 = scmp.lt.s32.totalorder %s3461_s14, %s3457_s28 }
 0x32a   : > { %p3459_p9 = pnand %p3458_p8, %p3622_p5 }
 0x32b   : > { %p3464_p13 = por %p3463_p12, %p3462_p11 }
 0x32c   : > { %p3460_p10 = pneg %p3459_p9 }
 0x32e   : > { %p3465_p0 = pnand %p3464_p13, %p3460_p10 }
 0x330   : > { %3468 = shalt.err (!%p3465_p0)
}
 0x331   : > { %3361 = dma.vmem_to_hbm [thread:$0]  (%p3622_p5), %s2484_s16, 64, %s2481_s8, %s2459_s29  }
 0x332   : > { %s3469_s17 = scalar_lea.vmem %s4968_s22, 16  ;;  %s3541_s21 = smov [#allocation6]  }
 0x333   : > { %p3470_p1 = scmp.ne.s32.totalorder %s4968_s22, %s3469_s17  ;;  %s3473_s19 = sshll.u32 %s3541_s21, 4  ;;  %s3474_s19 = int_to_ptr.vmem [resolvable:$false] %s3473_s19 }
 0x334   : > { %s3475_s2 = scalar_lea.vmem %s3474_s19, 32  ;;  %p3476_p4 = scmp.lt.s32.totalorder %s4968_s22, %s3474_s19 }
 0x335   : > { %p3471_p2 = pnand %p3470_p1, %p3622_p5  ;;  %p3477_p7 = scmp.lt.s32.totalorder %s3475_s2, %s3469_s17 }
 0x337   : > { %p3472_p3 = pneg %p3471_p2  ;;  %p3478_p8 = por %p3477_p7, %p3476_p4 }
 0x339   : > { %p3479_p9 = pnand %p3478_p8, %p3472_p3 }
 0x33b   : > { %3482 = shalt.err (!%p3479_p9)
}
 0x33c   : > { %s3483_s23 = scalar_lea.hbm %s4981_s0, 16  ;;  %s3487_s29 = scalar_lea.hbm %s5071_s7, 64 }
 0x33d   : > { %p3484_p10 = scmp.ne.s32.totalorder %s4981_s0, %s3483_s23  ;;  %p3488_p13 = scmp.lt.s32.totalorder %s4981_s0, %s5071_s7 }
 0x33e   : > { %p3489_p0 = scmp.lt.s32.totalorder %s3487_s29, %s3483_s23 }
 0x33f   : > { %p3485_p11 = pnand %p3484_p10, %p3622_p5 }
 0x340   : > { %p3490_p1 = por %p3489_p0, %p3488_p13 }
 0x341   : > { %p3486_p12 = pneg %p3485_p11 }
 0x343   : > { %p3491_p2 = pnand %p3490_p1, %p3486_p12 }
 0x345   : > { %3494 = shalt.err (!%p3491_p2)
}
 0x346   : > { %3363 = dma.vmem_to_hbm [thread:$0]  (%p3622_p5), %s4968_s22, 16, %s4981_s0, %s4983_s1   ;;  %vm2385_vm2 = vcmask 0  }
 0x347   : > { %s297_s14 = scalar_lea.vmem %s5070_s6, %s3655_s9 }
 0x35f   : > { %v2376_v35 = vpop.xlane.xlu0 %2375 }
 0x360   : > { %v2377_v43 = vrot.slane %v2376_v35, 4 }
 0x362   : > { %v2378_v3 = vadd.f32 %v2377_v43, %v2376_v35 }
 0x364   : > { %v2379_v48 = vrot.slane %v2378_v3, 2 }
 0x366   : > { %v2380_v14 = vadd.f32 %v2379_v48, %v2378_v3 }
 0x368   : > { %v2381_v31 = vrot.slane %v2380_v14, 1 }
 0x36a   : > { %v2382_v45 = vadd.f32 %v2381_v31, %v2380_v14 }
 0x36c   : > { %3359 = vpush %v2382_v45 }
 0x39d   : > { %s3360_s20 = spop %3359 }
 0x39e   : > { %v2384_v47 = vstv %s3360_s20 }
 0x39f   : > { %2386 = vst.msk [vmem:[%s297_s14] sm:$0x1] %vm2385_vm2, %v2384_v47 }
 0x3a0 PF: > { %p3377_p5 = scmp.ge.s32.totalorder %s3533_s27, 2  ;;  %s2524_s0 = sand.u32 1, %s3521_s24  }
 0x3a1   : > { %s2525_s1 = scalar_lea.sflag [#allocation3], %s2524_s0 }
 0x3a2   : > { %p3368_p3 = pnand %p3377_p5, %p3626_p6 }
 0x3a4   : > { %p3369_p4 = pneg %p3368_p3 }
 0x3a6   : > { %3512 = dma.done.wait (%p3369_p4), %s2525_s1, 64  }
 0x3a7   : > { %3514 = vsyncadd (%p3369_p4), %s2525_s1, 4294967232  ;;  %s5158_s11 = sadd.s32 4294967294, %s3533_s27  }
 0x3a8   : > { %s2533_s22 = sand.u32 1, %s5158_s11  }
 0x3a9   : > { %s2534_s9 = scalar_lea.sflag [#allocation5], %s2533_s22 }
 0x3aa   : > { %3516 = dma.done.wait (%p3369_p4), %s2534_s9, 32  }
 0x3ab   : > { %3518 = vsyncadd (%p3369_p4), %s2534_s9, 4294967264  ;;  %p21_p7 = scmp.ge.s32.totalorder %s3607_s30, 6   ;;  %s5159_s24 = smov %s3525_s25 }
 0x3ac   : > { %s5160_s25 = smov %s3529_s26  ;;  %s5161_s26 = smov %s3620_s10 }
 0x3ad   : > { %s5162_s27 = smov %s3607_s30  ;;  %23 = sbr.rel (!%p21_p7) target bundleno = 10 (0xa), region = 115 }
 0x3b2   :  { %2552 = vsyncpa [#allocation3], 1 }
 0x3b3   :  { %2554 = vsyncpa [#allocation3 + $0x1], 1 }
 0x3b4   :  { %2555 = vsyncpa [#allocation5], 1 }
 0x3b5   :  { %2557 = vsyncpa [#allocation5 + $0x1], 1 }

</bundles_post_ra>
